<compile_context>
chip_gen: v5e
topology: v5e:2x2
jax: 0.10.0
libtpu: 0.0.40
codegen_flags: <defaults>
</compile_context>

<pallas_src>
import functools

import jax
import jax.numpy as jnp
from jax import lax
from jax.experimental import pallas as pl
from jax.experimental.pallas import tpu as pltpu

VMEM_SPEC = pl.BlockSpec(memory_space=pltpu.MemorySpace.VMEM)


# ------------------------------ fused kernel -------------------------------- #

def _ln_tanh(y, gamma, beta):
    # tanh(LayerNorm(y)) over the last dim, eps=1e-5, affine.
    mu = jnp.mean(y, axis=-1, keepdims=True)
    var = jnp.mean((y - mu) ** 2, axis=-1, keepdims=True)
    return jnp.tanh((y - mu) * lax.rsqrt(var + 1e-5) * gamma + beta)


def _build_fused_kernel(num_layers):
    """Whole-model kernel: unrolls `num_layers` MPNN layers at trace time."""

    def kernel(*refs):
        (x_ref, ea_ref, src_col_ref, dst_col_ref, dst_row_ref, batch_row_ref,
         aw_ref, ab_ref, bw_ref, bb_ref, *rest) = refs
        layer_refs = rest[: 11 * num_layers]
        fc1_w, fc1_b, fc2_w, fc2_b, o_ref = rest[11 * num_layers:]

        f32 = jnp.float32
        n_nodes = x_ref.shape[0]
        n_edges = ea_ref.shape[0]
        n_graphs = o_ref.shape[1]

        # ---- input projections (atoms_linear / bonds_linear) ----
        h = jnp.dot(x_ref[...], aw_ref[...], preferred_element_type=f32) + ab_ref[...]
        e = jnp.dot(ea_ref[...], bw_ref[...], preferred_element_type=f32) + bb_ref[...]

        # ---- gather / scatter one-hots built in VMEM (hoisted out of the layer loop) ----
        iota_en = lax.broadcasted_iota(jnp.int32, (n_edges, n_nodes), 1)
        g_src = (iota_en == src_col_ref[...]).astype(f32)   # [E, N] gathers x[src]
        g_dst = (iota_en == dst_col_ref[...]).astype(f32)   # [E, N] gathers x[dst]
        iota_ne = lax.broadcasted_iota(jnp.int32, (n_nodes, n_edges), 0)
        s_dst = (iota_ne == dst_row_ref[...]).astype(f32)   # [N, E] scatter-add to dst

        # ---- MPNN layers (unrolled; weights stay VMEM-resident) ----
        for li in range(num_layers):
            (mwj, mwi, mwe, mb, mg, mbt,
             uwa, uwx, ub, ug, ubt) = layer_refs[11 * li: 11 * (li + 1)]

            x_j = jnp.dot(g_src, h, preferred_element_type=f32)   # x[src]
            x_i = jnp.dot(g_dst, h, preferred_element_type=f32)   # x[dst]
            # message: cat(x_j, x_i, e) @ W  ==  x_j@Wj + x_i@Wi + e@We
            y = (jnp.dot(x_j, mwj[...], preferred_element_type=f32)
                 + jnp.dot(x_i, mwi[...], preferred_element_type=f32)
                 + jnp.dot(e, mwe[...], preferred_element_type=f32)
                 + mb[...])
            msg = _ln_tanh(y, mg[...], mbt[...])

            # aggr='add'
            agg = jnp.dot(s_dst, msg, preferred_element_type=f32)  # [N, n_msg]

            # update: cat(agg, x) @ W == agg@Wa + x@Wx
            y2 = (jnp.dot(agg, uwa[...], preferred_element_type=f32)
                  + jnp.dot(h, uwx[...], preferred_element_type=f32)
                  + ub[...])
            h = _ln_tanh(y2, ug[...], ubt[...])

        # ---- fc head: Linear -> ReLU -> Linear ----
        h1 = jnp.maximum(
            jnp.dot(h, fc1_w[...], preferred_element_type=f32) + fc1_b[...], 0.0)
        h2 = jnp.dot(h1, fc2_w[...], preferred_element_type=f32) + fc2_b[...]  # [N, out]

        # ---- scatter(x.t(), batch, reduce='mean') -> [out_features, num_graphs] ----
        iota_gn = lax.broadcasted_iota(jnp.int32, (n_graphs, n_nodes), 0)
        pool = (iota_gn == batch_row_ref[...]).astype(f32)           # [G, N]
        counts = jnp.maximum(jnp.sum(pool, axis=1, keepdims=True), 1.0)
        pool = pool / counts
        # out[o, g] = sum_n h2[n, o] * pool[g, n]  (emitted transposed directly)
        o_ref[...] = lax.dot_general(
            h2, pool, dimension_numbers=(((0,), (1,)), ((), ())),
            preferred_element_type=f32)

    return kernel


# ----------------------------- parameter init ------------------------------ #

def init_linear(key, fan_in, fan_out):
    k1, k2 = jax.random.split(key)
    bound = 1.0 / jnp.sqrt(float(fan_in))
    w = jax.random.uniform(k1, (fan_in, fan_out), jnp.float32, -bound, bound)
    b = jax.random.uniform(k2, (1, fan_out), jnp.float32, -bound, bound)
    return w, b


def init_layernorm(n):
    return jnp.ones((1, n), jnp.float32), jnp.zeros((1, n), jnp.float32)


def init_model(key, n_atom_features, n_bond_features, mpnn_layers_args,
               hidden_layer_size, out_features):
    keys = jax.random.split(key, 4 + 2 * len(mpnn_layers_args))
    params = {}
    params["atoms_w"], params["atoms_b"] = init_linear(
        keys[0], n_atom_features, mpnn_layers_args[0][0])
    params["bonds_w"], params["bonds_b"] = init_linear(
        keys[1], n_bond_features, mpnn_layers_args[0][3])

    mpnns = []
    for li, (n_in, n_out, n_msg, n_edge) in enumerate(mpnn_layers_args):
        kmsg, kupd = keys[2 + 2 * li], keys[3 + 2 * li]
        p = {}
        msg_w, p["msg_b"] = init_linear(kmsg, 2 * n_in + n_edge, n_msg)
        # Split weights so the kernel avoids concatenation (cat order: x_j, x_i, e).
        p["msg_w_j"] = msg_w[:n_in]
        p["msg_w_i"] = msg_w[n_in:2 * n_in]
        p["msg_w_e"] = msg_w[2 * n_in:]
        p["msg_g"], p["msg_beta"] = init_layernorm(n_msg)

        upd_w, p["upd_b"] = init_linear(kupd, n_msg + n_in, n_out)
        p["upd_w_agg"] = upd_w[:n_msg]
        p["upd_w_x"] = upd_w[n_msg:]
        p["upd_g"], p["upd_beta"] = init_layernorm(n_out)
        mpnns.append(p)
    params["mpnns"] = mpnns

    params["fc1_w"], params["fc1_b"] = init_linear(
        keys[-2], mpnn_layers_args[-1][1], hidden_layer_size)
    params["fc2_w"], params["fc2_b"] = init_linear(
        keys[-1], hidden_layer_size, out_features)
    return params


# ------------------------------ forward pass ------------------------------- #

@functools.partial(jax.jit, static_argnames=("num_graphs",))
def model_forward(params, x, edge_index, edge_attr, batch, num_graphs):
    n_nodes = x.shape[0]
    n_edges = edge_attr.shape[0]
    src = edge_index[0].astype(jnp.int32)
    dst = edge_index[1].astype(jnp.int32)

    args = [
        x, edge_attr,
        src.reshape(n_edges, 1),          # for gather one-hot [E, N]
        dst.reshape(n_edges, 1),          # for gather one-hot [E, N]
        dst.reshape(1, n_edges),          # for scatter one-hot [N, E]
        batch.astype(jnp.int32).reshape(1, n_nodes),  # for pool matrix [G, N]
        params["atoms_w"], params["atoms_b"],
        params["bonds_w"], params["bonds_b"],
    ]
    for p in params["mpnns"]:
        args += [p["msg_w_j"], p["msg_w_i"], p["msg_w_e"],
                 p["msg_b"], p["msg_g"], p["msg_beta"],
                 p["upd_w_agg"], p["upd_w_x"],
                 p["upd_b"], p["upd_g"], p["upd_beta"]]
    args += [params["fc1_w"], params["fc1_b"], params["fc2_w"], params["fc2_b"]]

    out_features = params["fc2_w"].shape[1]
    kernel = _build_fused_kernel(len(params["mpnns"]))
    return pl.pallas_call(
        kernel,
        out_shape=jax.ShapeDtypeStruct((out_features, num_graphs), jnp.float32),
        in_specs=[VMEM_SPEC] * len(args),
        out_specs=VMEM_SPEC,
    )(*args)


# ----------------------------------- main ----------------------------------- #

if __name__ == "__main__":
    # Small synthetic graph batch.
    n_atom_features = 8
    n_bond_features = 6
    mpnn_layers_args = [(16, 16, 16, 16), (16, 16, 16, 16)]  # (in, out, msg, edge)
    hidden_layer_size = 32
    out_features = 4

    n_nodes = 8
    n_edges = 16
    num_graphs = 2

    key = jax.random.PRNGKey(0)
    kx, ke, ki, kp = jax.random.split(key, 4)

    x = jax.random.normal(kx, (n_nodes, n_atom_features), jnp.float32)
    edge_attr = jax.random.normal(ke, (n_edges, n_bond_features), jnp.float32)
    edge_index = jax.random.randint(ki, (2, n_edges), 0, n_nodes, jnp.int32)
    batch = jnp.repeat(jnp.arange(num_graphs, dtype=jnp.int32),
                       n_nodes // num_graphs)

    params = init_model(kp, n_atom_features, n_bond_features, mpnn_layers_args,
                        hidden_layer_size, out_features)

    out = model_forward(params, x, edge_index, edge_attr, batch,
                        num_graphs=num_graphs)
    out = jax.block_until_ready(out)
    assert out.shape == (out_features, num_graphs), out.shape
    assert bool(jnp.all(jnp.isfinite(out)))
    print("KERNEL_OK")
</pallas_src>

<mosaic_0001>
module attributes {stable_mosaic.version = 11 : i64} {
  func.func @kernel(%arg0: memref<8x8xf32, #tpu.memory_space<vmem>>, %arg1: memref<16x6xf32, #tpu.memory_space<vmem>>, %arg2: memref<16x1xi32, #tpu.memory_space<vmem>>, %arg3: memref<16x1xi32, #tpu.memory_space<vmem>>, %arg4: memref<1x16xi32, #tpu.memory_space<vmem>>, %arg5: memref<1x8xi32, #tpu.memory_space<vmem>>, %arg6: memref<8x16xf32, #tpu.memory_space<vmem>>, %arg7: memref<1x16xf32, #tpu.memory_space<vmem>>, %arg8: memref<6x16xf32, #tpu.memory_space<vmem>>, %arg9: memref<1x16xf32, #tpu.memory_space<vmem>>, %arg10: memref<16x16xf32, #tpu.memory_space<vmem>>, %arg11: memref<16x16xf32, #tpu.memory_space<vmem>>, %arg12: memref<16x16xf32, #tpu.memory_space<vmem>>, %arg13: memref<1x16xf32, #tpu.memory_space<vmem>>, %arg14: memref<1x16xf32, #tpu.memory_space<vmem>>, %arg15: memref<1x16xf32, #tpu.memory_space<vmem>>, %arg16: memref<16x16xf32, #tpu.memory_space<vmem>>, %arg17: memref<16x16xf32, #tpu.memory_space<vmem>>, %arg18: memref<1x16xf32, #tpu.memory_space<vmem>>, %arg19: memref<1x16xf32, #tpu.memory_space<vmem>>, %arg20: memref<1x16xf32, #tpu.memory_space<vmem>>, %arg21: memref<16x16xf32, #tpu.memory_space<vmem>>, %arg22: memref<16x16xf32, #tpu.memory_space<vmem>>, %arg23: memref<16x16xf32, #tpu.memory_space<vmem>>, %arg24: memref<1x16xf32, #tpu.memory_space<vmem>>, %arg25: memref<1x16xf32, #tpu.memory_space<vmem>>, %arg26: memref<1x16xf32, #tpu.memory_space<vmem>>, %arg27: memref<16x16xf32, #tpu.memory_space<vmem>>, %arg28: memref<16x16xf32, #tpu.memory_space<vmem>>, %arg29: memref<1x16xf32, #tpu.memory_space<vmem>>, %arg30: memref<1x16xf32, #tpu.memory_space<vmem>>, %arg31: memref<1x16xf32, #tpu.memory_space<vmem>>, %arg32: memref<16x32xf32, #tpu.memory_space<vmem>>, %arg33: memref<1x32xf32, #tpu.memory_space<vmem>>, %arg34: memref<32x4xf32, #tpu.memory_space<vmem>>, %arg35: memref<1x4xf32, #tpu.memory_space<vmem>>, %arg36: memref<4x2xf32, #tpu.memory_space<vmem>>) attributes {dimension_semantics = [], scalar_prefetch = 0 : i64, scratch_operands = 0 : i64, tpu.core_type = #tpu.core_type<tc>} {
    %c0 = arith.constant 0 : index
    %c0_0 = arith.constant 0 : index
    %0 = vector.load %arg0[%c0, %c0_0] : memref<8x8xf32, #tpu.memory_space<vmem>>, vector<8x8xf32>
    %c0_1 = arith.constant 0 : index
    %c0_2 = arith.constant 0 : index
    %1 = vector.load %arg6[%c0_1, %c0_2] : memref<8x16xf32, #tpu.memory_space<vmem>>, vector<8x16xf32>
    %cst = arith.constant dense<0.000000e+00> : vector<8x16xf32>
    %2 = tpu.matmul %0, %1, %cst {dimension_numbers = #tpu.dot_dimension_numbers<[1], [0], [0], [1], [0, 0, 1, 1], [], []>} : vector<8x8xf32>, vector<8x16xf32>, vector<8x16xf32> -> vector<8x16xf32>
    %c0_3 = arith.constant 0 : index
    %c0_4 = arith.constant 0 : index
    %3 = vector.load %arg7[%c0_3, %c0_4] : memref<1x16xf32, #tpu.memory_space<vmem>>, vector<1x16xf32>
    %4 = vector.broadcast %3 : vector<1x16xf32> to vector<8x16xf32>
    %5 = arith.addf %2, %4 : vector<8x16xf32>
    %c0_5 = arith.constant 0 : index
    %c0_6 = arith.constant 0 : index
    %6 = vector.load %arg1[%c0_5, %c0_6] : memref<16x6xf32, #tpu.memory_space<vmem>>, vector<16x6xf32>
    %c0_7 = arith.constant 0 : index
    %c0_8 = arith.constant 0 : index
    %7 = vector.load %arg8[%c0_7, %c0_8] : memref<6x16xf32, #tpu.memory_space<vmem>>, vector<6x16xf32>
    %cst_9 = arith.constant dense<0.000000e+00> : vector<16x16xf32>
    %8 = tpu.matmul %6, %7, %cst_9 {dimension_numbers = #tpu.dot_dimension_numbers<[1], [0], [0], [1], [0, 0, 1, 1], [], []>} : vector<16x6xf32>, vector<6x16xf32>, vector<16x16xf32> -> vector<16x16xf32>
    %c0_10 = arith.constant 0 : index
    %c0_11 = arith.constant 0 : index
    %9 = vector.load %arg9[%c0_10, %c0_11] : memref<1x16xf32, #tpu.memory_space<vmem>>, vector<1x16xf32>
    %10 = vector.broadcast %9 : vector<1x16xf32> to vector<16x16xf32>
    %11 = arith.addf %8, %10 : vector<16x16xf32>
    %12 = tpu.iota {dimensions = array<i32: 1>} : vector<16x8xi32>
    %c0_12 = arith.constant 0 : index
    %c0_13 = arith.constant 0 : index
    %13 = vector.load %arg2[%c0_12, %c0_13] : memref<16x1xi32, #tpu.memory_space<vmem>>, vector<16x1xi32>
    %14 = vector.broadcast %13 : vector<16x1xi32> to vector<16x8xi32>
    %15 = arith.cmpi eq, %12, %14 : vector<16x8xi32>
    %16 = arith.extui %15 : vector<16x8xi1> to vector<16x8xi32>
    %17 = arith.sitofp %16 : vector<16x8xi32> to vector<16x8xf32>
    %c0_14 = arith.constant 0 : index
    %c0_15 = arith.constant 0 : index
    %18 = vector.load %arg3[%c0_14, %c0_15] : memref<16x1xi32, #tpu.memory_space<vmem>>, vector<16x1xi32>
    %19 = vector.broadcast %18 : vector<16x1xi32> to vector<16x8xi32>
    %20 = arith.cmpi eq, %12, %19 : vector<16x8xi32>
    %21 = arith.extui %20 : vector<16x8xi1> to vector<16x8xi32>
    %22 = arith.sitofp %21 : vector<16x8xi32> to vector<16x8xf32>
    %23 = tpu.iota {dimensions = array<i32: 0>} : vector<8x16xi32>
    %c0_16 = arith.constant 0 : index
    %c0_17 = arith.constant 0 : index
    %24 = vector.load %arg4[%c0_16, %c0_17] : memref<1x16xi32, #tpu.memory_space<vmem>>, vector<1x16xi32>
    %25 = vector.broadcast %24 : vector<1x16xi32> to vector<8x16xi32>
    %26 = arith.cmpi eq, %23, %25 : vector<8x16xi32>
    %27 = arith.extui %26 : vector<8x16xi1> to vector<8x16xi32>
    %28 = arith.sitofp %27 : vector<8x16xi32> to vector<8x16xf32>
    %cst_18 = arith.constant dense<0.000000e+00> : vector<16x16xf32>
    %29 = tpu.matmul %17, %5, %cst_18 {dimension_numbers = #tpu.dot_dimension_numbers<[1], [0], [0], [1], [0, 0, 1, 1], [], []>} : vector<16x8xf32>, vector<8x16xf32>, vector<16x16xf32> -> vector<16x16xf32>
    %cst_19 = arith.constant dense<0.000000e+00> : vector<16x16xf32>
    %30 = tpu.matmul %22, %5, %cst_19 {dimension_numbers = #tpu.dot_dimension_numbers<[1], [0], [0], [1], [0, 0, 1, 1], [], []>} : vector<16x8xf32>, vector<8x16xf32>, vector<16x16xf32> -> vector<16x16xf32>
    %c0_20 = arith.constant 0 : index
    %c0_21 = arith.constant 0 : index
    %31 = vector.load %arg10[%c0_20, %c0_21] : memref<16x16xf32, #tpu.memory_space<vmem>>, vector<16x16xf32>
    %cst_22 = arith.constant dense<0.000000e+00> : vector<16x16xf32>
    %32 = tpu.matmul %29, %31, %cst_22 {dimension_numbers = #tpu.dot_dimension_numbers<[1], [0], [0], [1], [0, 0, 1, 1], [], []>} : vector<16x16xf32>, vector<16x16xf32>, vector<16x16xf32> -> vector<16x16xf32>
    %c0_23 = arith.constant 0 : index
    %c0_24 = arith.constant 0 : index
    %33 = vector.load %arg11[%c0_23, %c0_24] : memref<16x16xf32, #tpu.memory_space<vmem>>, vector<16x16xf32>
    %cst_25 = arith.constant dense<0.000000e+00> : vector<16x16xf32>
    %34 = tpu.matmul %30, %33, %cst_25 {dimension_numbers = #tpu.dot_dimension_numbers<[1], [0], [0], [1], [0, 0, 1, 1], [], []>} : vector<16x16xf32>, vector<16x16xf32>, vector<16x16xf32> -> vector<16x16xf32>
    %35 = arith.addf %32, %34 : vector<16x16xf32>
    %c0_26 = arith.constant 0 : index
    %c0_27 = arith.constant 0 : index
    %36 = vector.load %arg12[%c0_26, %c0_27] : memref<16x16xf32, #tpu.memory_space<vmem>>, vector<16x16xf32>
    %cst_28 = arith.constant dense<0.000000e+00> : vector<16x16xf32>
    %37 = tpu.matmul %11, %36, %cst_28 {dimension_numbers = #tpu.dot_dimension_numbers<[1], [0], [0], [1], [0, 0, 1, 1], [], []>} : vector<16x16xf32>, vector<16x16xf32>, vector<16x16xf32> -> vector<16x16xf32>
    %38 = arith.addf %35, %37 : vector<16x16xf32>
    %c0_29 = arith.constant 0 : index
    %c0_30 = arith.constant 0 : index
    %39 = vector.load %arg13[%c0_29, %c0_30] : memref<1x16xf32, #tpu.memory_space<vmem>>, vector<1x16xf32>
    %40 = vector.broadcast %39 : vector<1x16xf32> to vector<16x16xf32>
    %41 = arith.addf %38, %40 : vector<16x16xf32>
    %c0_31 = arith.constant 0 : index
    %c0_32 = arith.constant 0 : index
    %42 = vector.load %arg14[%c0_31, %c0_32] : memref<1x16xf32, #tpu.memory_space<vmem>>, vector<1x16xf32>
    %c0_33 = arith.constant 0 : index
    %c0_34 = arith.constant 0 : index
    %43 = vector.load %arg15[%c0_33, %c0_34] : memref<1x16xf32, #tpu.memory_space<vmem>>, vector<1x16xf32>
    %cst_35 = arith.constant dense<0.000000e+00> : vector<16xf32>
    %44 = vector.multi_reduction <add>, %41, %cst_35 [1] : vector<16x16xf32> to vector<16xf32>
    %45 = vector.shape_cast %44 : vector<16xf32> to vector<16x1xf32>
    %cst_36 = arith.constant 1.600000e+01 : f32
    %46 = vector.broadcast %cst_36 : f32 to vector<16x1xf32>
    %47 = arith.divf %45, %46 : vector<16x1xf32>
    %48 = vector.broadcast %47 : vector<16x1xf32> to vector<16x16xf32>
    %49 = arith.subf %41, %48 : vector<16x16xf32>
    %50 = arith.mulf %49, %49 : vector<16x16xf32>
    %cst_37 = arith.constant dense<0.000000e+00> : vector<16xf32>
    %51 = vector.multi_reduction <add>, %50, %cst_37 [1] : vector<16x16xf32> to vector<16xf32>
    %52 = vector.shape_cast %51 : vector<16xf32> to vector<16x1xf32>
    %cst_38 = arith.constant 1.600000e+01 : f32
    %53 = vector.broadcast %cst_38 : f32 to vector<16x1xf32>
    %54 = arith.divf %52, %53 : vector<16x1xf32>
    %55 = vector.broadcast %47 : vector<16x1xf32> to vector<16x16xf32>
    %56 = arith.subf %41, %55 : vector<16x16xf32>
    %cst_39 = arith.constant 9.99999974E-6 : f32
    %57 = vector.broadcast %cst_39 : f32 to vector<16x1xf32>
    %58 = arith.addf %54, %57 : vector<16x1xf32>
    %59 = math.rsqrt %58 : vector<16x1xf32>
    %60 = vector.broadcast %59 : vector<16x1xf32> to vector<16x16xf32>
    %61 = arith.mulf %56, %60 : vector<16x16xf32>
    %62 = vector.broadcast %42 : vector<1x16xf32> to vector<16x16xf32>
    %63 = arith.mulf %61, %62 : vector<16x16xf32>
    %64 = vector.broadcast %43 : vector<1x16xf32> to vector<16x16xf32>
    %65 = arith.addf %63, %64 : vector<16x16xf32>
    %66 = math.tanh %65 : vector<16x16xf32>
    %cst_40 = arith.constant dense<0.000000e+00> : vector<8x16xf32>
    %67 = tpu.matmul %28, %66, %cst_40 {dimension_numbers = #tpu.dot_dimension_numbers<[1], [0], [0], [1], [0, 0, 1, 1], [], []>} : vector<8x16xf32>, vector<16x16xf32>, vector<8x16xf32> -> vector<8x16xf32>
    %c0_41 = arith.constant 0 : index
    %c0_42 = arith.constant 0 : index
    %68 = vector.load %arg16[%c0_41, %c0_42] : memref<16x16xf32, #tpu.memory_space<vmem>>, vector<16x16xf32>
    %cst_43 = arith.constant dense<0.000000e+00> : vector<8x16xf32>
    %69 = tpu.matmul %67, %68, %cst_43 {dimension_numbers = #tpu.dot_dimension_numbers<[1], [0], [0], [1], [0, 0, 1, 1], [], []>} : vector<8x16xf32>, vector<16x16xf32>, vector<8x16xf32> -> vector<8x16xf32>
    %c0_44 = arith.constant 0 : index
    %c0_45 = arith.constant 0 : index
    %70 = vector.load %arg17[%c0_44, %c0_45] : memref<16x16xf32, #tpu.memory_space<vmem>>, vector<16x16xf32>
    %cst_46 = arith.constant dense<0.000000e+00> : vector<8x16xf32>
    %71 = tpu.matmul %5, %70, %cst_46 {dimension_numbers = #tpu.dot_dimension_numbers<[1], [0], [0], [1], [0, 0, 1, 1], [], []>} : vector<8x16xf32>, vector<16x16xf32>, vector<8x16xf32> -> vector<8x16xf32>
    %72 = arith.addf %69, %71 : vector<8x16xf32>
    %c0_47 = arith.constant 0 : index
    %c0_48 = arith.constant 0 : index
    %73 = vector.load %arg18[%c0_47, %c0_48] : memref<1x16xf32, #tpu.memory_space<vmem>>, vector<1x16xf32>
    %74 = vector.broadcast %73 : vector<1x16xf32> to vector<8x16xf32>
    %75 = arith.addf %72, %74 : vector<8x16xf32>
    %c0_49 = arith.constant 0 : index
    %c0_50 = arith.constant 0 : index
    %76 = vector.load %arg19[%c0_49, %c0_50] : memref<1x16xf32, #tpu.memory_space<vmem>>, vector<1x16xf32>
    %c0_51 = arith.constant 0 : index
    %c0_52 = arith.constant 0 : index
    %77 = vector.load %arg20[%c0_51, %c0_52] : memref<1x16xf32, #tpu.memory_space<vmem>>, vector<1x16xf32>
    %cst_53 = arith.constant dense<0.000000e+00> : vector<8xf32>
    %78 = vector.multi_reduction <add>, %75, %cst_53 [1] : vector<8x16xf32> to vector<8xf32>
    %79 = vector.shape_cast %78 : vector<8xf32> to vector<8x1xf32>
    %cst_54 = arith.constant 1.600000e+01 : f32
    %80 = vector.broadcast %cst_54 : f32 to vector<8x1xf32>
    %81 = arith.divf %79, %80 : vector<8x1xf32>
    %82 = vector.broadcast %81 : vector<8x1xf32> to vector<8x16xf32>
    %83 = arith.subf %75, %82 : vector<8x16xf32>
    %84 = arith.mulf %83, %83 : vector<8x16xf32>
    %cst_55 = arith.constant dense<0.000000e+00> : vector<8xf32>
    %85 = vector.multi_reduction <add>, %84, %cst_55 [1] : vector<8x16xf32> to vector<8xf32>
    %86 = vector.shape_cast %85 : vector<8xf32> to vector<8x1xf32>
    %cst_56 = arith.constant 1.600000e+01 : f32
    %87 = vector.broadcast %cst_56 : f32 to vector<8x1xf32>
    %88 = arith.divf %86, %87 : vector<8x1xf32>
    %89 = vector.broadcast %81 : vector<8x1xf32> to vector<8x16xf32>
    %90 = arith.subf %75, %89 : vector<8x16xf32>
    %cst_57 = arith.constant 9.99999974E-6 : f32
    %91 = vector.broadcast %cst_57 : f32 to vector<8x1xf32>
    %92 = arith.addf %88, %91 : vector<8x1xf32>
    %93 = math.rsqrt %92 : vector<8x1xf32>
    %94 = vector.broadcast %93 : vector<8x1xf32> to vector<8x16xf32>
    %95 = arith.mulf %90, %94 : vector<8x16xf32>
    %96 = vector.broadcast %76 : vector<1x16xf32> to vector<8x16xf32>
    %97 = arith.mulf %95, %96 : vector<8x16xf32>
    %98 = vector.broadcast %77 : vector<1x16xf32> to vector<8x16xf32>
    %99 = arith.addf %97, %98 : vector<8x16xf32>
    %100 = math.tanh %99 : vector<8x16xf32>
    %cst_58 = arith.constant dense<0.000000e+00> : vector<16x16xf32>
    %101 = tpu.matmul %17, %100, %cst_58 {dimension_numbers = #tpu.dot_dimension_numbers<[1], [0], [0], [1], [0, 0, 1, 1], [], []>} : vector<16x8xf32>, vector<8x16xf32>, vector<16x16xf32> -> vector<16x16xf32>
    %cst_59 = arith.constant dense<0.000000e+00> : vector<16x16xf32>
    %102 = tpu.matmul %22, %100, %cst_59 {dimension_numbers = #tpu.dot_dimension_numbers<[1], [0], [0], [1], [0, 0, 1, 1], [], []>} : vector<16x8xf32>, vector<8x16xf32>, vector<16x16xf32> -> vector<16x16xf32>
    %c0_60 = arith.constant 0 : index
    %c0_61 = arith.constant 0 : index
    %103 = vector.load %arg21[%c0_60, %c0_61] : memref<16x16xf32, #tpu.memory_space<vmem>>, vector<16x16xf32>
    %cst_62 = arith.constant dense<0.000000e+00> : vector<16x16xf32>
    %104 = tpu.matmul %101, %103, %cst_62 {dimension_numbers = #tpu.dot_dimension_numbers<[1], [0], [0], [1], [0, 0, 1, 1], [], []>} : vector<16x16xf32>, vector<16x16xf32>, vector<16x16xf32> -> vector<16x16xf32>
    %c0_63 = arith.constant 0 : index
    %c0_64 = arith.constant 0 : index
    %105 = vector.load %arg22[%c0_63, %c0_64] : memref<16x16xf32, #tpu.memory_space<vmem>>, vector<16x16xf32>
    %cst_65 = arith.constant dense<0.000000e+00> : vector<16x16xf32>
    %106 = tpu.matmul %102, %105, %cst_65 {dimension_numbers = #tpu.dot_dimension_numbers<[1], [0], [0], [1], [0, 0, 1, 1], [], []>} : vector<16x16xf32>, vector<16x16xf32>, vector<16x16xf32> -> vector<16x16xf32>
    %107 = arith.addf %104, %106 : vector<16x16xf32>
    %c0_66 = arith.constant 0 : index
    %c0_67 = arith.constant 0 : index
    %108 = vector.load %arg23[%c0_66, %c0_67] : memref<16x16xf32, #tpu.memory_space<vmem>>, vector<16x16xf32>
    %cst_68 = arith.constant dense<0.000000e+00> : vector<16x16xf32>
    %109 = tpu.matmul %11, %108, %cst_68 {dimension_numbers = #tpu.dot_dimension_numbers<[1], [0], [0], [1], [0, 0, 1, 1], [], []>} : vector<16x16xf32>, vector<16x16xf32>, vector<16x16xf32> -> vector<16x16xf32>
    %110 = arith.addf %107, %109 : vector<16x16xf32>
    %c0_69 = arith.constant 0 : index
    %c0_70 = arith.constant 0 : index
    %111 = vector.load %arg24[%c0_69, %c0_70] : memref<1x16xf32, #tpu.memory_space<vmem>>, vector<1x16xf32>
    %112 = vector.broadcast %111 : vector<1x16xf32> to vector<16x16xf32>
    %113 = arith.addf %110, %112 : vector<16x16xf32>
    %c0_71 = arith.constant 0 : index
    %c0_72 = arith.constant 0 : index
    %114 = vector.load %arg25[%c0_71, %c0_72] : memref<1x16xf32, #tpu.memory_space<vmem>>, vector<1x16xf32>
    %c0_73 = arith.constant 0 : index
    %c0_74 = arith.constant 0 : index
    %115 = vector.load %arg26[%c0_73, %c0_74] : memref<1x16xf32, #tpu.memory_space<vmem>>, vector<1x16xf32>
    %cst_75 = arith.constant dense<0.000000e+00> : vector<16xf32>
    %116 = vector.multi_reduction <add>, %113, %cst_75 [1] : vector<16x16xf32> to vector<16xf32>
    %117 = vector.shape_cast %116 : vector<16xf32> to vector<16x1xf32>
    %cst_76 = arith.constant 1.600000e+01 : f32
    %118 = vector.broadcast %cst_76 : f32 to vector<16x1xf32>
    %119 = arith.divf %117, %118 : vector<16x1xf32>
    %120 = vector.broadcast %119 : vector<16x1xf32> to vector<16x16xf32>
    %121 = arith.subf %113, %120 : vector<16x16xf32>
    %122 = arith.mulf %121, %121 : vector<16x16xf32>
    %cst_77 = arith.constant dense<0.000000e+00> : vector<16xf32>
    %123 = vector.multi_reduction <add>, %122, %cst_77 [1] : vector<16x16xf32> to vector<16xf32>
    %124 = vector.shape_cast %123 : vector<16xf32> to vector<16x1xf32>
    %cst_78 = arith.constant 1.600000e+01 : f32
    %125 = vector.broadcast %cst_78 : f32 to vector<16x1xf32>
    %126 = arith.divf %124, %125 : vector<16x1xf32>
    %127 = vector.broadcast %119 : vector<16x1xf32> to vector<16x16xf32>
    %128 = arith.subf %113, %127 : vector<16x16xf32>
    %cst_79 = arith.constant 9.99999974E-6 : f32
    %129 = vector.broadcast %cst_79 : f32 to vector<16x1xf32>
    %130 = arith.addf %126, %129 : vector<16x1xf32>
    %131 = math.rsqrt %130 : vector<16x1xf32>
    %132 = vector.broadcast %131 : vector<16x1xf32> to vector<16x16xf32>
    %133 = arith.mulf %128, %132 : vector<16x16xf32>
    %134 = vector.broadcast %114 : vector<1x16xf32> to vector<16x16xf32>
    %135 = arith.mulf %133, %134 : vector<16x16xf32>
    %136 = vector.broadcast %115 : vector<1x16xf32> to vector<16x16xf32>
    %137 = arith.addf %135, %136 : vector<16x16xf32>
    %138 = math.tanh %137 : vector<16x16xf32>
    %cst_80 = arith.constant dense<0.000000e+00> : vector<8x16xf32>
    %139 = tpu.matmul %28, %138, %cst_80 {dimension_numbers = #tpu.dot_dimension_numbers<[1], [0], [0], [1], [0, 0, 1, 1], [], []>} : vector<8x16xf32>, vector<16x16xf32>, vector<8x16xf32> -> vector<8x16xf32>
    %c0_81 = arith.constant 0 : index
    %c0_82 = arith.constant 0 : index
    %140 = vector.load %arg27[%c0_81, %c0_82] : memref<16x16xf32, #tpu.memory_space<vmem>>, vector<16x16xf32>
    %cst_83 = arith.constant dense<0.000000e+00> : vector<8x16xf32>
    %141 = tpu.matmul %139, %140, %cst_83 {dimension_numbers = #tpu.dot_dimension_numbers<[1], [0], [0], [1], [0, 0, 1, 1], [], []>} : vector<8x16xf32>, vector<16x16xf32>, vector<8x16xf32> -> vector<8x16xf32>
    %c0_84 = arith.constant 0 : index
    %c0_85 = arith.constant 0 : index
    %142 = vector.load %arg28[%c0_84, %c0_85] : memref<16x16xf32, #tpu.memory_space<vmem>>, vector<16x16xf32>
    %cst_86 = arith.constant dense<0.000000e+00> : vector<8x16xf32>
    %143 = tpu.matmul %100, %142, %cst_86 {dimension_numbers = #tpu.dot_dimension_numbers<[1], [0], [0], [1], [0, 0, 1, 1], [], []>} : vector<8x16xf32>, vector<16x16xf32>, vector<8x16xf32> -> vector<8x16xf32>
    %144 = arith.addf %141, %143 : vector<8x16xf32>
    %c0_87 = arith.constant 0 : index
    %c0_88 = arith.constant 0 : index
    %145 = vector.load %arg29[%c0_87, %c0_88] : memref<1x16xf32, #tpu.memory_space<vmem>>, vector<1x16xf32>
    %146 = vector.broadcast %145 : vector<1x16xf32> to vector<8x16xf32>
    %147 = arith.addf %144, %146 : vector<8x16xf32>
    %c0_89 = arith.constant 0 : index
    %c0_90 = arith.constant 0 : index
    %148 = vector.load %arg30[%c0_89, %c0_90] : memref<1x16xf32, #tpu.memory_space<vmem>>, vector<1x16xf32>
    %c0_91 = arith.constant 0 : index
    %c0_92 = arith.constant 0 : index
    %149 = vector.load %arg31[%c0_91, %c0_92] : memref<1x16xf32, #tpu.memory_space<vmem>>, vector<1x16xf32>
    %cst_93 = arith.constant dense<0.000000e+00> : vector<8xf32>
    %150 = vector.multi_reduction <add>, %147, %cst_93 [1] : vector<8x16xf32> to vector<8xf32>
    %151 = vector.shape_cast %150 : vector<8xf32> to vector<8x1xf32>
    %cst_94 = arith.constant 1.600000e+01 : f32
    %152 = vector.broadcast %cst_94 : f32 to vector<8x1xf32>
    %153 = arith.divf %151, %152 : vector<8x1xf32>
    %154 = vector.broadcast %153 : vector<8x1xf32> to vector<8x16xf32>
    %155 = arith.subf %147, %154 : vector<8x16xf32>
    %156 = arith.mulf %155, %155 : vector<8x16xf32>
    %cst_95 = arith.constant dense<0.000000e+00> : vector<8xf32>
    %157 = vector.multi_reduction <add>, %156, %cst_95 [1] : vector<8x16xf32> to vector<8xf32>
    %158 = vector.shape_cast %157 : vector<8xf32> to vector<8x1xf32>
    %cst_96 = arith.constant 1.600000e+01 : f32
    %159 = vector.broadcast %cst_96 : f32 to vector<8x1xf32>
    %160 = arith.divf %158, %159 : vector<8x1xf32>
    %161 = vector.broadcast %153 : vector<8x1xf32> to vector<8x16xf32>
    %162 = arith.subf %147, %161 : vector<8x16xf32>
    %cst_97 = arith.constant 9.99999974E-6 : f32
    %163 = vector.broadcast %cst_97 : f32 to vector<8x1xf32>
    %164 = arith.addf %160, %163 : vector<8x1xf32>
    %165 = math.rsqrt %164 : vector<8x1xf32>
    %166 = vector.broadcast %165 : vector<8x1xf32> to vector<8x16xf32>
    %167 = arith.mulf %162, %166 : vector<8x16xf32>
    %168 = vector.broadcast %148 : vector<1x16xf32> to vector<8x16xf32>
    %169 = arith.mulf %167, %168 : vector<8x16xf32>
    %170 = vector.broadcast %149 : vector<1x16xf32> to vector<8x16xf32>
    %171 = arith.addf %169, %170 : vector<8x16xf32>
    %172 = math.tanh %171 : vector<8x16xf32>
    %c0_98 = arith.constant 0 : index
    %c0_99 = arith.constant 0 : index
    %173 = vector.load %arg32[%c0_98, %c0_99] : memref<16x32xf32, #tpu.memory_space<vmem>>, vector<16x32xf32>
    %cst_100 = arith.constant dense<0.000000e+00> : vector<8x32xf32>
    %174 = tpu.matmul %172, %173, %cst_100 {dimension_numbers = #tpu.dot_dimension_numbers<[1], [0], [0], [1], [0, 0, 1, 1], [], []>} : vector<8x16xf32>, vector<16x32xf32>, vector<8x32xf32> -> vector<8x32xf32>
    %c0_101 = arith.constant 0 : index
    %c0_102 = arith.constant 0 : index
    %175 = vector.load %arg33[%c0_101, %c0_102] : memref<1x32xf32, #tpu.memory_space<vmem>>, vector<1x32xf32>
    %176 = vector.broadcast %175 : vector<1x32xf32> to vector<8x32xf32>
    %177 = arith.addf %174, %176 : vector<8x32xf32>
    %cst_103 = arith.constant 0.000000e+00 : f32
    %178 = vector.broadcast %cst_103 : f32 to vector<8x32xf32>
    %179 = arith.maximumf %177, %178 : vector<8x32xf32>
    %c0_104 = arith.constant 0 : index
    %c0_105 = arith.constant 0 : index
    %180 = vector.load %arg34[%c0_104, %c0_105] : memref<32x4xf32, #tpu.memory_space<vmem>>, vector<32x4xf32>
    %cst_106 = arith.constant dense<0.000000e+00> : vector<8x4xf32>
    %181 = tpu.matmul %179, %180, %cst_106 {dimension_numbers = #tpu.dot_dimension_numbers<[1], [0], [0], [1], [0, 0, 1, 1], [], []>} : vector<8x32xf32>, vector<32x4xf32>, vector<8x4xf32> -> vector<8x4xf32>
    %c0_107 = arith.constant 0 : index
    %c0_108 = arith.constant 0 : index
    %182 = vector.load %arg35[%c0_107, %c0_108] : memref<1x4xf32, #tpu.memory_space<vmem>>, vector<1x4xf32>
    %183 = vector.broadcast %182 : vector<1x4xf32> to vector<8x4xf32>
    %184 = arith.addf %181, %183 : vector<8x4xf32>
    %185 = tpu.iota {dimensions = array<i32: 0>} : vector<2x8xi32>
    %c0_109 = arith.constant 0 : index
    %c0_110 = arith.constant 0 : index
    %186 = vector.load %arg5[%c0_109, %c0_110] : memref<1x8xi32, #tpu.memory_space<vmem>>, vector<1x8xi32>
    %187 = vector.broadcast %186 : vector<1x8xi32> to vector<2x8xi32>
    %188 = arith.cmpi eq, %185, %187 : vector<2x8xi32>
    %189 = arith.extui %188 : vector<2x8xi1> to vector<2x8xi32>
    %190 = arith.sitofp %189 : vector<2x8xi32> to vector<2x8xf32>
    %cst_111 = arith.constant dense<0.000000e+00> : vector<2xf32>
    %191 = vector.multi_reduction <add>, %190, %cst_111 [1] : vector<2x8xf32> to vector<2xf32>
    %192 = vector.shape_cast %191 : vector<2xf32> to vector<2x1xf32>
    %cst_112 = arith.constant 1.000000e+00 : f32
    %193 = vector.broadcast %cst_112 : f32 to vector<2x1xf32>
    %194 = arith.maximumf %192, %193 : vector<2x1xf32>
    %195 = vector.broadcast %194 : vector<2x1xf32> to vector<2x8xf32>
    %196 = arith.divf %190, %195 : vector<2x8xf32>
    %cst_113 = arith.constant dense<0.000000e+00> : vector<4x2xf32>
    %197 = tpu.matmul %184, %196, %cst_113 {dimension_numbers = #tpu.dot_dimension_numbers<[0], [1], [1], [0], [0, 1, 1, 0], [], []>} : vector<8x4xf32>, vector<2x8xf32>, vector<4x2xf32> -> vector<4x2xf32>
    %c0_114 = arith.constant 0 : index
    %c0_115 = arith.constant 0 : index
    %198 = vector.load %arg36[%c0_114, %c0_115] : memref<4x2xf32, #tpu.memory_space<vmem>>, vector<4x2xf32>
    tpu.vector_store %arg36[%c0_114, %c0_115], %197 {strides = array<i32>} : memref<4x2xf32, #tpu.memory_space<vmem>>, vector<4x2xf32>,
    return
  }
}

</mosaic_0001>

<bundles_post_ra>
// kernel: model_forward.1
= control target key start
LH: loop header
LB: loop body
LE: loop exit
PB: predicated region body
PF: predicated region fallthrough
CT: control target
= control target key end

     0   :  { %s1909_s6 = smov 1   ;;  %s1910_s10 = smov 2   ;;  %s2367_s0 = inlined_call_operand.smem [shape: u32[37], index: -1, kind: input, shape index: {}] }
   0x1   :  { %s1975_s5 = sld [smem:[%s2367_s0]]   ;;  %s1911_s14 = smov 3  }
   0x2   :  { %s1980_s9 = sld [smem:[%s2367_s0 + %s1909_s6]]   ;;  %s1912_s18 = smov 4  }
   0x3   :  { %s1985_s13 = sld [smem:[%s2367_s0 + %s1910_s10]]   ;;  %s1913_s22 = smov 5  }
   0x4   :  { %s1990_s17 = sld [smem:[%s2367_s0 + %s1911_s14]]   ;;  %s1914_s26 = smov 6  }
   0x5   :  { %s1995_s21 = sld [smem:[%s2367_s0 + %s1912_s18]]   ;;  %s1915_s30 = smov 7  }
   0x6   :  { %s2000_s25 = sld [smem:[%s2367_s0 + %s1913_s22]]   ;;  %s1916_s4 = smov 8  }
   0x7   :  { %2378 = sst [smem:[#allocation37_spill]] %s1975_s5  ;;  %s1917_s10 = smov 9  }
   0x8   :  { %2379 = sst [smem:[#allocation38_spill]] %s1980_s9  ;;  %s1918_s15 = smov 10  }
   0x9   :  { %2380 = sst [smem:[#allocation39_spill]] %s1985_s13  ;;  %s1919_s20 = smov 11  }
   0xa   :  { %2381 = sst [smem:[#allocation40_spill]] %s1990_s17  ;;  %s1921_s1 = smov 13  }
   0xb   :  { %2382 = sst [smem:[#allocation41_spill]] %s1995_s21  ;;  %s1922_s7 = smov 14  }
   0xc   :  { %2383 = sst [smem:[#allocation42_spill]] %s2000_s25  ;;  %s1924_s22 = smov 16  }
   0xd   :  { %s2005_s29 = sld [smem:[%s2367_s0 + %s1914_s26]]   ;;  %s1920_s26 = smov 12  }
   0xe   :  { %s2010_s3 = sld [smem:[%s2367_s0 + %s1915_s30]]   ;;  %s1925_s28 = smov 17  }
   0xf   :  { %s2015_s8 = sld [smem:[%s2367_s0 + %s1916_s4]]  }
  0x10   :  { %s2020_s14 = sld [smem:[%s2367_s0 + %s1917_s10]]  }
  0x11   :  { %s2025_s19 = sld [smem:[%s2367_s0 + %s1918_s15]]   ;;  %s1923_s15 = smov 15  }
  0x12   :  { %s2030_s24 = sld [smem:[%s2367_s0 + %s1919_s20]]  }
  0x13   :  { %s2035_s30 = sld [smem:[%s2367_s0 + %s1920_s26]]  }
  0x14   :  { %s2040_s6 = sld [smem:[%s2367_s0 + %s1921_s1]]  }
  0x15   :  { %s2045_s12 = sld [smem:[%s2367_s0 + %s1922_s7]]   ;;  %s1926_s7 = smov 18  }
  0x16   :  { %2384 = sst [smem:[#allocation43_spill]] %s2020_s14 }
  0x17   :  { %2385 = sst [smem:[#allocation44_spill]] %s2025_s19 }
  0x18   :  { %2386 = sst [smem:[#allocation45_spill]] %s2030_s24 }
  0x19   :  { %2387 = sst [smem:[#allocation46_spill]] %s2035_s30 }
  0x1a   :  { %2388 = sst [smem:[#allocation47_spill]] %s2040_s6 }
  0x1b   :  { %s2050_s20 = sld [smem:[%s2367_s0 + %s1923_s15]]   ;;  %s1927_s15 = smov 19  }
  0x1c   :  { %s2055_s27 = sld [smem:[%s2367_s0 + %s1924_s22]]   ;;  %s1928_s22 = smov 20  }
  0x1d   :  { %s2060_s4 = sld [smem:[%s2367_s0 + %s1925_s28]]   ;;  %s1929_s28 = smov 21  }
  0x1e   :  { %s2065_s25 = sld [smem:[%s2367_s0 + %s1926_s7]]   ;;  %s1930_s7 = smov 22  }
  0x1f   :  { %s2070_s21 = sld [smem:[%s2367_s0 + %s1927_s15]]   ;;  %s1931_s15 = smov 23  }
  0x20   :  { %s2080_s6 = sld [smem:[%s2367_s0 + %s1929_s28]]   ;;  %s1933_s28 = smov 25  }
  0x21   :  { %s2090_s14 = sld [smem:[%s2367_s0 + %s1931_s15]]   ;;  %s1935_s15 = smov 27  }
  0x22   :  { %2389 = sst [smem:[#allocation48_spill]] %s2055_s27 }
  0x23   :  { %2390 = sst [smem:[#allocation49_spill]] %s2060_s4 }
  0x24   :  { %s2075_s27 = sld [smem:[%s2367_s0 + %s1928_s22]]   ;;  %s1932_s22 = smov 24  }
  0x25   :  { %s2085_s4 = sld [smem:[%s2367_s0 + %s1930_s7]]   ;;  %s1934_s7 = smov 26  }
  0x26   :  { %2391 = sst [smem:[#allocation50_spill]] %s2080_s6 }
  0x27   :  { %s2095_s19 = sld [smem:[%s2367_s0 + %s1932_s22]]   ;;  %s1936_s22 = smov 28  }
  0x28   :  { %s2100_s6 = sld [smem:[%s2367_s0 + %s1933_s28]]   ;;  %s1937_s28 = smov 29  }
  0x29   :  { %s2105_s24 = sld [smem:[%s2367_s0 + %s1934_s7]]   ;;  %s1938_s7 = smov 30  }
  0x2a   :  { %s2110_s30 = sld [smem:[%s2367_s0 + %s1935_s15]]   ;;  %s1939_s15 = smov 31  }
  0x2b   :  { %s2115_s9 = sld [smem:[%s2367_s0 + %s1936_s22]]   ;;  %s1940_s22 = smov 32  }
  0x2c   :  { %s2125_s17 = sld [smem:[%s2367_s0 + %s1938_s7]]   ;;  %s1942_s7 = smov 34  }
  0x2d   :  { %s2130_s5 = sld [smem:[%s2367_s0 + %s1939_s15]]   ;;  %s1943_s15 = smov 35  }
  0x2e   :  { %2392 = sst [smem:[#allocation51_spill]] %s2100_s6 }
  0x2f   :  { %s2120_s6 = sld [smem:[%s2367_s0 + %s1937_s28]]   ;;  %s1941_s28 = smov 33  }
  0x30   :  { %s2135_s13 = sld [smem:[%s2367_s0 + %s1940_s22]]   ;;  %s1944_s22 = smov 36  }
  0x32   :  { %2394 = sst [smem:[#allocation53_spill]] %s2125_s17 }
  0x33   :  { %2395 = sst [smem:[#allocation54_spill]] %s2130_s5 }
  0x34   :  { %s2145_s17 = sld [smem:[%s2367_s0 + %s1942_s7]]  }
  0x35   :  { %2393 = sst [smem:[#allocation52_spill]] %s2120_s6 }
  0x36   :  { %2396 = sst [smem:[#allocation55_spill]] %s2135_s13 }
  0x37   :  { %s2140_s6 = sld [smem:[%s2367_s0 + %s1941_s28]]  }
  0x38   :  { %s2150_s5 = sld [smem:[%s2367_s0 + %s1943_s15]]  }
  0x39   :  { %s2155_s13 = sld [smem:[%s2367_s0 + %s1944_s22]]  }
  0x3a   :  { %78 = vsyncpa [#allocation3], 0 }
  0x3b   :  { %79 = vsyncpa [#allocation5], 0 }
  0x3c   :  { %80 = vsyncpa [#allocation8], 0 }
  0x3d   :  { %81 = vsyncpa [#allocation11], 0 }
  0x3e   :  { %82 = vsyncpa [#allocation14], 0 }
  0x3f   :  { %83 = vsyncpa [#allocation17], 0 }
  0x40   :  { %84 = vsyncpa [#allocation20], 0 }
  0x41   :  { %85 = vsyncpa [#allocation23], 0  ;;  %s115_s28 = sshll.u32 %s2010_s3, 4  ;;  %s116_s28 = int_to_ptr.hbm [resolvable:$true] %s115_s28 }
  0x42   :  { %86 = vsyncpa [#allocation26], 0  ;;  %s1945_s1 = smov [#allocation4]   ;;  %s147_s0 = sshll.u32 %s2045_s12, 4  ;;  %s148_s0 = int_to_ptr.hbm [resolvable:$true] %s147_s0 }
  0x43   :  { %s117_s2 = sshll.u32 %s1945_s1, 4  ;;  %s1483_s7 = sshra.s32 %s116_s28, 4  ;;  %s118_s2 = int_to_ptr.vmem [resolvable:$true] %s117_s2  ;;  %s1484_s7 = int_to_ptr.hbm [resolvable:$true] %s1483_s7 }
  0x44   :  { %s1485_s10 = scalar_lea.hbm %s1484_s7, 1  ;;  %s1487_s11 = scalar_lea.hbm %s2010_s3, 1 }
  0x45   :  { %p1486_p0 = scmp.ne.s32.totalorder %s1484_s7, %s1485_s10  ;;  %p1488_p1 = scmp.lt.s32.totalorder %s1484_s7, %s2010_s3 }
  0x46   :  { %p1489_p2 = scmp.lt.s32.totalorder %s1487_s11, %s1485_s10 }
  0x48   :  { %p1490_p3 = por %p1489_p2, %p1488_p1 }
  0x4a   :  { %p1491_p4 = pnand %p1490_p3, %p1486_p0 }
  0x4c   :  { %1494 = shalt.err (!%p1491_p4)
}
  0x4d   :  { %120 = dma.hbm_to_vmem [thread:$0]  %s116_s28, 16, %s118_s2, [#allocation5]  }
  0x4e   :  { %s1946_s15 = smov [#allocation7]   ;;  %s173_s18 = sshll.u32 %s2065_s25, 4  ;;  %s174_s18 = int_to_ptr.hbm [resolvable:$true] %s173_s18 }
  0x4f   :  { %s149_s16 = sshll.u32 %s1946_s15, 4  ;;  %s1507_s22 = sshra.s32 %s148_s0, 4  ;;  %s150_s16 = int_to_ptr.vmem [resolvable:$true] %s149_s16  ;;  %s1508_s22 = int_to_ptr.hbm [resolvable:$true] %s1507_s22 }
  0x50   :  { %s1509_s23 = scalar_lea.hbm %s1508_s22, 1  ;;  %s1511_s26 = scalar_lea.hbm %s2045_s12, 1 }
  0x51   :  { %p1510_p5 = scmp.ne.s32.totalorder %s1508_s22, %s1509_s23  ;;  %p1512_p6 = scmp.lt.s32.totalorder %s1508_s22, %s2045_s12 }
  0x52   :  { %p1513_p7 = scmp.lt.s32.totalorder %s1511_s26, %s1509_s23 }
  0x54   :  { %p1514_p8 = por %p1513_p7, %p1512_p6 }
  0x56   :  { %p1515_p9 = pnand %p1514_p8, %p1510_p5 }
  0x58   :  { %1518 = shalt.err (!%p1515_p9)
}
  0x59   :  { %152 = dma.hbm_to_vmem [thread:$0]  %s148_s0, 16, %s150_s16, [#allocation8]  }
  0x5a   :  { %s195_s3 = sshll.u32 %s2075_s27, 4  ;;  %s1947_s28 = smov [#allocation10]   ;;  %s196_s3 = int_to_ptr.hbm [resolvable:$true] %s195_s3 }
  0x5b   :  { %s175_s1 = sshll.u32 %s1947_s28, 4  ;;  %s1531_s2 = sshra.s32 %s174_s18, 4  ;;  %s176_s1 = int_to_ptr.vmem [resolvable:$true] %s175_s1  ;;  %s1532_s2 = int_to_ptr.hbm [resolvable:$true] %s1531_s2 }
  0x5c   :  { %s1533_s7 = scalar_lea.hbm %s1532_s2, 1  ;;  %s1535_s10 = scalar_lea.hbm %s2065_s25, 1 }
  0x5d   :  { %p1534_p10 = scmp.ne.s32.totalorder %s1532_s2, %s1533_s7  ;;  %p1536_p11 = scmp.lt.s32.totalorder %s1532_s2, %s2065_s25 }
  0x5e   :  { %p1537_p12 = scmp.lt.s32.totalorder %s1535_s10, %s1533_s7 }
  0x60   :  { %p1538_p13 = por %p1537_p12, %p1536_p11 }
  0x62   :  { %p1539_p0 = pnand %p1538_p13, %p1534_p10 }
  0x64   :  { %1542 = shalt.err (!%p1539_p0)
}
  0x65   :  { %178 = dma.hbm_to_vmem [thread:$0]  %s174_s18, 16, %s176_s1, [#allocation11]  }
  0x66   :  { %s1948_s12 = smov [#allocation13]   ;;  %s1555_s11 = sshra.s32 %s196_s3, 4  ;;  %s1556_s11 = int_to_ptr.hbm [resolvable:$true] %s1555_s11 }
  0x67   :  { %s197_s0 = sshll.u32 %s1948_s12, 4  ;;  %s1557_s15 = scalar_lea.hbm %s1556_s11, 1  ;;  %s198_s0 = int_to_ptr.vmem [resolvable:$true] %s197_s0 }
  0x68   :  { %p1558_p1 = scmp.ne.s32.totalorder %s1556_s11, %s1557_s15  ;;  %s1559_s16 = scalar_lea.hbm %s2075_s27, 1 }
  0x69   :  { %p1560_p2 = scmp.lt.s32.totalorder %s1556_s11, %s2075_s27  ;;  %p1561_p3 = scmp.lt.s32.totalorder %s1559_s16, %s1557_s15 }
  0x6b   :  { %p1562_p4 = por %p1561_p3, %p1560_p2 }
  0x6d   :  { %p1563_p5 = pnand %p1562_p4, %p1558_p1 }
  0x6f   :  { %1566 = shalt.err (!%p1563_p5)
}
  0x70   :  { %200 = dma.hbm_to_vmem [thread:$0]  %s196_s3, 16, %s198_s0, [#allocation14]  }
  0x71   :  { %s220_s25 = sshll.u32 %s2090_s14, 4  ;;  %s1949_s18 = smov [#allocation16]   ;;  %s221_s25 = int_to_ptr.hbm [resolvable:$true] %s220_s25 }
  0x72   :  { %s222_s22 = sshll.u32 %s1949_s18, 4  ;;  %s247_s23 = sshll.u32 %s2105_s24, 4  ;;  %s223_s22 = int_to_ptr.vmem [resolvable:$true] %s222_s22  ;;  %s248_s23 = int_to_ptr.hbm [resolvable:$true] %s247_s23 }
  0x73   :  { %s1579_s26 = sshra.s32 %s221_s25, 4  ;;  %s1583_s27 = scalar_lea.hbm %s2090_s14, 16  ;;  %s1580_s26 = int_to_ptr.hbm [resolvable:$true] %s1579_s26 }
  0x74   :  { %s1581_s28 = scalar_lea.hbm %s1580_s26, 16  ;;  %p1584_p7 = scmp.lt.s32.totalorder %s1580_s26, %s2090_s14 }
  0x75   :  { %p1582_p6 = scmp.ne.s32.totalorder %s1580_s26, %s1581_s28  ;;  %p1585_p8 = scmp.lt.s32.totalorder %s1583_s27, %s1581_s28 }
  0x77   :  { %p1586_p9 = por %p1585_p8, %p1584_p7 }
  0x79   :  { %p1587_p10 = pnand %p1586_p9, %p1582_p6 }
  0x7b   :  { %1590 = shalt.err (!%p1587_p10)
}
  0x7c   :  { %s1950_s3 = smov 128   ;;  %s1951_s1 = smov 8  }
  0x7d   :  { %228 = dma.hbm_to_vmem [thread:$0]  %s221_s25, 256, %s223_s22, [#allocation17], %s1950_s3, %s1950_s3, %s1951_s1  }
  0x7e   :  { %s1952_s2 = smov [#allocation19]   ;;  %s270_s10 = sshll.u32 %s2115_s9, 4  ;;  %s2177_s10 = int_to_ptr.hbm [resolvable:$true] %s270_s10 }
  0x7f   :  { %s249_s7 = sshll.u32 %s1952_s2, 4  ;;  %s1603_s14 = sshra.s32 %s248_s23, 4  ;;  %s250_s7 = int_to_ptr.vmem [resolvable:$true] %s249_s7  ;;  %s1604_s14 = int_to_ptr.hbm [resolvable:$true] %s1603_s14 }
  0x80   :  { %s1605_s12 = scalar_lea.hbm %s1604_s14, 1  ;;  %s1607_s0 = scalar_lea.hbm %s2105_s24, 1 }
  0x81   :  { %p1606_p11 = scmp.ne.s32.totalorder %s1604_s14, %s1605_s12  ;;  %p1608_p12 = scmp.lt.s32.totalorder %s1604_s14, %s2105_s24 }
  0x82   :  { %p1609_p13 = scmp.lt.s32.totalorder %s1607_s0, %s1605_s12 }
  0x84   :  { %p1610_p0 = por %p1609_p13, %p1608_p12 }
  0x86   :  { %p1611_p1 = pnand %p1610_p0, %p1606_p11 }
  0x88   :  { %1614 = shalt.err (!%p1611_p1)
}
  0x89   :  { %252 = dma.hbm_to_vmem [thread:$0]  %s248_s23, 16, %s250_s7, [#allocation20]  }
  0x8a   :  { %s303_s11 = sshll.u32 %s2140_s6, 4  ;;  %s1953_s15 = smov [#allocation22]   ;;  %s304_s11 = int_to_ptr.hbm [resolvable:$true] %s303_s11 }
  0x8b   :  { %s272_s16 = sshll.u32 %s1953_s15, 4  ;;  %s1627_s25 = sshra.s32 %s2177_s10, 4  ;;  %s273_s16 = int_to_ptr.vmem [resolvable:$true] %s272_s16  ;;  %s1628_s25 = int_to_ptr.hbm [resolvable:$true] %s1627_s25 }
  0x8c   :  { %s1629_s18 = scalar_lea.hbm %s1628_s25, 16  ;;  %s1631_s22 = scalar_lea.hbm %s2115_s9, 16 }
  0x8d   :  { %p1630_p2 = scmp.ne.s32.totalorder %s1628_s25, %s1629_s18  ;;  %p1632_p3 = scmp.lt.s32.totalorder %s1628_s25, %s2115_s9 }
  0x8e   :  { %p1633_p4 = scmp.lt.s32.totalorder %s1631_s22, %s1629_s18 }
  0x90   :  { %p1634_p5 = por %p1633_p4, %p1632_p3 }
  0x92   :  { %p1635_p6 = pnand %p1634_p5, %p1630_p2 }
  0x94   :  { %1638 = shalt.err (!%p1635_p6)
}
  0x95   :  { %278 = dma.hbm_to_vmem [thread:$0]  %s2177_s10, 256, %s273_s16, [#allocation23], %s1950_s3, %s1950_s3, %s1951_s1  }
  0x96   :  { %s1954_s24 = smov [#allocation25]   ;;  %s104_s26 = sshll.u32 %s2005_s29, 4  ;;  %s105_s26 = int_to_ptr.hbm [resolvable:$true] %s104_s26 }
  0x97   :  { %s305_s23 = sshll.u32 %s1954_s24, 4  ;;  %s1651_s28 = sshra.s32 %s304_s11, 4  ;;  %s306_s23 = int_to_ptr.vmem [resolvable:$true] %s305_s23  ;;  %s1652_s28 = int_to_ptr.hbm [resolvable:$true] %s1651_s28 }
  0x98   :  { %s1653_s9 = scalar_lea.hbm %s1652_s28, 1  ;;  %s1655_s27 = scalar_lea.hbm %s2140_s6, 1 }
  0x99   :  { %p1654_p7 = scmp.ne.s32.totalorder %s1652_s28, %s1653_s9  ;;  %p1656_p8 = scmp.lt.s32.totalorder %s1652_s28, %s2140_s6 }
  0x9a   :  { %p1657_p9 = scmp.lt.s32.totalorder %s1655_s27, %s1653_s9 }
  0x9c   :  { %p1658_p10 = por %p1657_p9, %p1656_p8 }
  0x9e   :  { %p1659_p11 = pnand %p1658_p10, %p1654_p7 }
  0xa0   :  { %1662 = shalt.err (!%p1659_p11)
}
  0xa1   :  { %308 = dma.hbm_to_vmem [thread:$0]  %s304_s11, 16, %s306_s23, [#allocation26]  }
  0xa2   :  { %s126_s2 = sshll.u32 %s2015_s8, 4  ;;  %s1955_s7 = smov [#allocation2]   ;;  %s127_s2 = int_to_ptr.hbm [resolvable:$true] %s126_s2 }
  0xa3   :  { %s106_s10 = sshll.u32 %s1955_s7, 4  ;;  %s1675_s14 = sshra.s32 %s105_s26, 4  ;;  %s107_s10 = int_to_ptr.vmem [resolvable:$true] %s106_s10  ;;  %s1676_s14 = int_to_ptr.hbm [resolvable:$true] %s1675_s14 }
  0xa4   :  { %s1677_s12 = scalar_lea.hbm %s1676_s14, 8  ;;  %s1679_s0 = scalar_lea.hbm %s2005_s29, 8 }
  0xa5   :  { %p1678_p12 = scmp.ne.s32.totalorder %s1676_s14, %s1677_s12  ;;  %p1680_p13 = scmp.lt.s32.totalorder %s1676_s14, %s2005_s29 }
  0xa6   :  { %p1681_p0 = scmp.lt.s32.totalorder %s1679_s0, %s1677_s12 }
  0xa8   :  { %p1682_p1 = por %p1681_p0, %p1680_p13 }
  0xaa   :  { %p1683_p2 = pnand %p1682_p1, %p1678_p12 }
  0xac   :  { %1686 = shalt.err (!%p1683_p2)
}
  0xad   :  { %109 = dma.hbm_to_vmem [thread:$0]  %s105_s26, 128, %s107_s10, [#allocation3]  }
  0xae   :  { %s1956_s6 = smov [#allocation6]   ;;  %s158_s15 = sshll.u32 %s2050_s20, 4  ;;  %s159_s15 = int_to_ptr.hbm [resolvable:$true] %s158_s15 }
  0xaf   :  { %s128_s11 = sshll.u32 %s1956_s6, 4  ;;  %s1699_s16 = sshra.s32 %s127_s2, 4  ;;  %s129_s11 = int_to_ptr.vmem [resolvable:$true] %s128_s11  ;;  %s1700_s16 = int_to_ptr.hbm [resolvable:$true] %s1699_s16 }
  0xb0   :  { %s1701_s25 = scalar_lea.hbm %s1700_s16, 8  ;;  %s1703_s18 = scalar_lea.hbm %s2015_s8, 8 }
  0xb1   :  { %p1702_p3 = scmp.ne.s32.totalorder %s1700_s16, %s1701_s25  ;;  %p1704_p4 = scmp.lt.s32.totalorder %s1700_s16, %s2015_s8 }
  0xb2   :  { %p1705_p5 = scmp.lt.s32.totalorder %s1703_s18, %s1701_s25 }
  0xb4   :  { %p1706_p6 = por %p1705_p5, %p1704_p4 }
  0xb6   :  { %p1707_p7 = pnand %p1706_p6, %p1702_p3 }
  0xb8   :  { %1710 = shalt.err (!%p1707_p7)
}
  0xb9   :  { %131 = dma.hbm_to_vmem [thread:$0]  %s127_s2, 128, %s129_s11, [#allocation5]  }
  0xba   :  { %s184_s29 = sshll.u32 %s2070_s21, 4  ;;  %s1957_s22 = smov [#allocation9]   ;;  %s185_s29 = int_to_ptr.hbm [resolvable:$true] %s184_s29 }
  0xbb   :  { %s160_s24 = sshll.u32 %s1957_s22, 4  ;;  %s1723_s23 = sshra.s32 %s159_s15, 4  ;;  %s161_s24 = int_to_ptr.vmem [resolvable:$true] %s160_s24  ;;  %s1724_s23 = int_to_ptr.hbm [resolvable:$true] %s1723_s23 }
  0xbc   :  { %s1725_s26 = scalar_lea.hbm %s1724_s23, 1  ;;  %s1727_s28 = scalar_lea.hbm %s2050_s20, 1 }
  0xbd   :  { %p1726_p8 = scmp.ne.s32.totalorder %s1724_s23, %s1725_s26  ;;  %p1728_p9 = scmp.lt.s32.totalorder %s1724_s23, %s2050_s20 }
  0xbe   :  { %p1729_p10 = scmp.lt.s32.totalorder %s1727_s28, %s1725_s26 }
  0xc0   :  { %p1730_p11 = por %p1729_p10, %p1728_p9 }
  0xc2   :  { %p1731_p12 = pnand %p1730_p11, %p1726_p8 }
  0xc4   :  { %1734 = shalt.err (!%p1731_p12)
}
  0xc5   :  { %163 = dma.hbm_to_vmem [thread:$0]  %s159_s15, 16, %s161_s24, [#allocation8]  }
  0xc6   :  { %s1958_s8 = smov [#allocation12]   ;;  %s207_s27 = sshll.u32 %s2085_s4, 4  ;;  %s2202_s27 = int_to_ptr.hbm [resolvable:$true] %s207_s27 }
  0xc7   :  { %s186_s9 = sshll.u32 %s1958_s8, 4  ;;  %s1747_s2 = sshra.s32 %s185_s29, 4  ;;  %s187_s9 = int_to_ptr.vmem [resolvable:$true] %s186_s9  ;;  %s1748_s2 = int_to_ptr.hbm [resolvable:$true] %s1747_s2 }
  0xc8   :  { %s1749_s7 = scalar_lea.hbm %s1748_s2, 1  ;;  %s1751_s10 = scalar_lea.hbm %s2070_s21, 1 }
  0xc9   :  { %p1750_p13 = scmp.ne.s32.totalorder %s1748_s2, %s1749_s7  ;;  %p1752_p0 = scmp.lt.s32.totalorder %s1748_s2, %s2070_s21 }
  0xca   :  { %p1753_p1 = scmp.lt.s32.totalorder %s1751_s10, %s1749_s7 }
  0xcc   :  { %p1754_p2 = por %p1753_p1, %p1752_p0 }
  0xce   :  { %p1755_p3 = pnand %p1754_p2, %p1750_p13 }
  0xd0   :  { %1758 = shalt.err (!%p1755_p3)
}
  0xd1   :  { %189 = dma.hbm_to_vmem [thread:$0]  %s185_s29, 16, %s187_s9, [#allocation11]  }
  0xd2   :  { %s234_s20 = sshll.u32 %s2095_s19, 4  ;;  %s1959_s14 = smov [#allocation15]   ;;  %s235_s20 = int_to_ptr.hbm [resolvable:$true] %s234_s20 }
  0xd3   :  { %s209_s12 = sshll.u32 %s1959_s14, 4  ;;  %s1771_s0 = sshra.s32 %s2202_s27, 4  ;;  %s210_s12 = int_to_ptr.vmem [resolvable:$true] %s209_s12  ;;  %s1772_s0 = int_to_ptr.hbm [resolvable:$true] %s1771_s0 }
  0xd4   :  { %s1773_s6 = scalar_lea.hbm %s1772_s0, 16  ;;  %s1775_s11 = scalar_lea.hbm %s2085_s4, 16 }
  0xd5   :  { %p1774_p4 = scmp.ne.s32.totalorder %s1772_s0, %s1773_s6  ;;  %p1776_p5 = scmp.lt.s32.totalorder %s1772_s0, %s2085_s4 }
  0xd6   :  { %p1777_p6 = scmp.lt.s32.totalorder %s1775_s11, %s1773_s6 }
  0xd8   :  { %p1778_p7 = por %p1777_p6, %p1776_p5 }
  0xda   :  { %p1779_p8 = pnand %p1778_p7, %p1774_p4 }
  0xdc   :  { %1782 = shalt.err (!%p1779_p8)
}
  0xdd   :  { %215 = dma.hbm_to_vmem [thread:$0]  %s2202_s27, 256, %s210_s12, [#allocation14], %s1950_s3, %s1950_s3, %s1951_s1  }
  0xde   :  { %s1960_s21 = smov [#allocation18]   ;;  %s257_s16 = sshll.u32 %s2110_s30, 4  ;;  %s2215_s16 = int_to_ptr.hbm [resolvable:$true] %s257_s16 }
  0xdf   :  { %s236_s15 = sshll.u32 %s1960_s21, 4  ;;  %s1795_s25 = sshra.s32 %s235_s20, 4  ;;  %s237_s15 = int_to_ptr.vmem [resolvable:$true] %s236_s15  ;;  %s1796_s25 = int_to_ptr.hbm [resolvable:$true] %s1795_s25 }
  0xe0   :  { %s1797_s4 = scalar_lea.hbm %s1796_s25, 1  ;;  %s1799_s18 = scalar_lea.hbm %s2095_s19, 1 }
  0xe1   :  { %p1798_p9 = scmp.ne.s32.totalorder %s1796_s25, %s1797_s4  ;;  %p1800_p10 = scmp.lt.s32.totalorder %s1796_s25, %s2095_s19 }
  0xe2   :  { %p1801_p11 = scmp.lt.s32.totalorder %s1799_s18, %s1797_s4 }
  0xe4   :  { %p1802_p12 = por %p1801_p11, %p1800_p10 }
  0xe6   :  { %p1803_p13 = pnand %p1802_p12, %p1798_p9 }
  0xe8   :  { %1806 = shalt.err (!%p1803_p13)
}
  0xe9   :  { %239 = dma.hbm_to_vmem [thread:$0]  %s235_s20, 16, %s237_s15, [#allocation17]  }
  0xea   :  { %s2397_s29 = sld [smem:[#allocation55_spill]]  ;;  %s1961_s24 = smov [#allocation21]  }
  0xeb   :  { %s259_s23 = sshll.u32 %s1961_s24, 4  ;;  %s1819_s26 = sshra.s32 %s2215_s16, 4  ;;  %s260_s23 = int_to_ptr.vmem [resolvable:$true] %s259_s23  ;;  %s1820_s26 = int_to_ptr.hbm [resolvable:$true] %s1819_s26 }
  0xec   :  { %s1821_s28 = scalar_lea.hbm %s1820_s26, 16  ;;  %s1823_s19 = scalar_lea.hbm %s2110_s30, 16 }
  0xed   :  { %p1822_p0 = scmp.ne.s32.totalorder %s1820_s26, %s1821_s28  ;;  %p1824_p1 = scmp.lt.s32.totalorder %s1820_s26, %s2110_s30 }
  0xee   :  { %p1825_p2 = scmp.lt.s32.totalorder %s1823_s19, %s1821_s28 }
  0xf0   :  { %s289_s22 = sshll.u32 %s2397_s29, 4  ;;  %p1826_p3 = por %p1825_p2, %p1824_p1  ;;  %s2220_s22 = int_to_ptr.hbm [resolvable:$true] %s289_s22 }
  0xf2   :  { %p1827_p4 = pnand %p1826_p3, %p1822_p0 }
  0xf4   :  { %1830 = shalt.err (!%p1827_p4)
}
  0xf5   :  { %265 = dma.hbm_to_vmem [thread:$0]  %s2215_s16, 256, %s260_s23, [#allocation20], %s1950_s3, %s1950_s3, %s1951_s1  }
  0xf6   :  { %s1962_s8 = smov [#allocation24]   ;;  %s316_s27 = sshll.u32 %s2150_s5, 4  ;;  %s317_s27 = int_to_ptr.hbm [resolvable:$true] %s316_s27 }
  0xf7   :  { %s291_s9 = sshll.u32 %s1962_s8, 4  ;;  %s1843_s2 = sshra.s32 %s2220_s22, 4  ;;  %s292_s9 = int_to_ptr.vmem [resolvable:$true] %s291_s9  ;;  %s1844_s2 = int_to_ptr.hbm [resolvable:$true] %s1843_s2 }
  0xf8   :  { %s1845_s30 = scalar_lea.hbm %s1844_s2, 16  ;;  %s1847_s7 = scalar_lea.hbm %s2397_s29, 16 }
  0xf9   :  { %p1846_p5 = scmp.ne.s32.totalorder %s1844_s2, %s1845_s30  ;;  %p1848_p6 = scmp.lt.s32.totalorder %s1844_s2, %s2397_s29 }
  0xfa   :  { %p1849_p7 = scmp.lt.s32.totalorder %s1847_s7, %s1845_s30 }
  0xfc   :  { %p1850_p8 = por %p1849_p7, %p1848_p6 }
  0xfe   :  { %p1851_p9 = pnand %p1850_p8, %p1846_p5 }
 0x100   :  { %1854 = shalt.err (!%p1851_p9)
}
 0x101   :  { %297 = dma.hbm_to_vmem [thread:$0]  %s2220_s22, 256, %s292_s9, [#allocation23], %s1950_s3, %s1950_s3, %s1951_s1  }
 0x102   :  { %s1963_s10 = smov [#allocation27]   ;;  %s1867_s14 = sshra.s32 %s317_s27, 4  ;;  %s1868_s14 = int_to_ptr.hbm [resolvable:$true] %s1867_s14 }
 0x103   :  { %s318_s20 = sshll.u32 %s1963_s10, 4  ;;  %s1869_s12 = scalar_lea.hbm %s1868_s14, 1  ;;  %s319_s20 = int_to_ptr.vmem [resolvable:$true] %s318_s20 }
 0x104   :  { %p1870_p10 = scmp.ne.s32.totalorder %s1868_s14, %s1869_s12  ;;  %s1871_s0 = scalar_lea.hbm %s2150_s5, 1 }
 0x105   :  { %p1872_p11 = scmp.lt.s32.totalorder %s1868_s14, %s2150_s5  ;;  %p1873_p12 = scmp.lt.s32.totalorder %s1871_s0, %s1869_s12 }
 0x107   :  { %p1874_p13 = por %p1873_p12, %p1872_p11 }
 0x109   :  { %p1875_p0 = pnand %p1874_p13, %p1870_p10 }
 0x10b   :  { %1878 = shalt.err (!%p1875_p0)
}
 0x10c   :  { %321 = dma.hbm_to_vmem [thread:$0]  %s317_s27, 16, %s319_s20, [#allocation26]  }
 0x10d   :  { %1891 = dma.done.wait [#allocation3], 128  }
 0x10e   :  { %1892 = vsyncadd [#allocation3], 4294967168 }
 0x10f   :  { %1893 = dma.done.wait [#allocation5], 144  }
 0x110   :  { %1894 = vsyncadd [#allocation5], 4294967152 }
 0x111   :  { %1895 = dma.done.wait [#allocation8], 32  }
 0x112   :  { %1896 = vsyncadd [#allocation8], 4294967264 }
 0x113   :  { %1897 = dma.done.wait [#allocation11], 32  }
 0x114   :  { %1898 = vsyncadd [#allocation11], 4294967264 }
 0x115   :  { %1899 = dma.done.wait [#allocation14], 272  }
 0x116   :  { %1900 = vsyncadd [#allocation14], 4294967024 }
 0x117   :  { %1901 = dma.done.wait [#allocation17], 272  }
 0x118   :  { %1902 = vsyncadd [#allocation17], 4294967024 }
 0x119   :  { %1903 = dma.done.wait [#allocation20], 272  }
 0x11a   :  { %1904 = vsyncadd [#allocation20], 4294967024 }
 0x11b   :  { %1905 = dma.done.wait [#allocation23], 512  }
 0x11c   :  { %1906 = vsyncadd [#allocation23], 4294966784 }
 0x11d   :  { %1907 = dma.done.wait [#allocation26], 32  }
 0x11e   :  { %1908 = vsyncadd [#allocation26], 4294967264  ;;  %s2398_s5 = sld [smem:[#allocation39_spill]]  ;;  %v1964_v0 = vmov 0   ;;  %vm396_vm0 = vcmask 64512   ;;  %v391_v2 = vld [vmem:[#allocation2] sm:$0xff]  ;;  %v461_v11 = vlaneseq }
 0x11f   :  { %s2399_s3 = sld [smem:[#allocation37_spill]]  ;;  %1435 = vset.pattern.permute.xlu0 %v1964_v0  ;;  %1436 = vset.pattern.permute.xlu1 %v1964_v0  ;;  %v422_v7 = vld [vmem:[#allocation6] sm:$0x3f]  ;;  %vm434_vm1 = vcmask 1045504   ;;  %vm427_vm2 = vcmask 48128   ;;  %v1965_v18 = vmov 0.0  }
 0x120   :  { %s2400_s1 = sld [smem:[#allocation40_spill]]  ;;  %415 = vmatpush.msra.mxu0 %v391_v2  ;;  %1338 = vmatpush.msk.msra.mxu1 %vm434_vm1, %v422_v7  ;;  %v462_v13 = vand.u32 127, %v461_v11  ;;  %v1437_v15 = vld [vmem:[#allocation4] ss:$0 sm:$0xff]  ;;  %vm560_vm7 = vcmask 130048   ;;  %v1966_v56 = vmov 16.0  }
 0x121   :  { %s2401_s6 = sld [smem:[#allocation38_spill]]  ;;  %1455 = vrcp.f32 %v1966_v56 }
 0x122   :  { %s2402_s11 = sld [smem:[#allocation46_spill]] }
 0x123   :  { %s2403_s21 = sld [smem:[#allocation45_spill]] }
 0x124   :  { %v463_v1 = vld [vmem:[%s2398_s5] sm:$0xff]  ;;  %v464_v4 = vld [vmem:[%s2398_s5 + $0x8] sm:$0xff]  ;;  %s2404_s15 = sld [smem:[#allocation44_spill]] }
 0x125   :  { %v390_v3 = vld [vmem:[%s2399_s3] sm:$0xff]  ;;  %466 = vperm.xlu0 %1435, %v463_v1   ;;  %469 = vperm.xlu1 %1436, %v464_v4   ;;  %s2405_s16 = sld [smem:[#allocation43_spill]] }
 0x126   :  { %1337 = vmatmul.msk.f32.vlgmr.msra.gmra.mxu0 %vm396_vm0, %v390_v3  ;;  %v477_v5 = vld [vmem:[%s2400_s1] sm:$0xff]  ;;  %v478_v6 = vld [vmem:[%s2400_s1 + $0x8] sm:$0xff]  ;;  %s2406_s25 = sld [smem:[#allocation49_spill]] }
 0x127   :  { %v420_v8 = vld [vmem:[%s2401_s6] sm:$0xff]  ;;  %v421_v9 = vld [vmem:[%s2401_s6 + $0x8] sm:$0xff]  ;;  %s2407_s4 = sld [smem:[#allocation47_spill]]  ;;  %v1456_v57 = vpop.eup %1455 }
 0x128   :  { %1339 = vmatmul.msk.f32.vlgmr.msra.gmra.mxu1 %vm427_vm2, %v420_v8  ;;  %v620_v24 = vld [vmem:[%s2402_s11 + $0x8] sm:$0xff]  ;;  %v619_v25 = vld [vmem:[%s2402_s11] sm:$0xff]  ;;  %v667_v58 = vmul.f32 16.0, %v1456_v57  ;;  %vm671_vm8 = vweird.f32 %v1456_v57  ;;  %s2408_s18 = sld [smem:[#allocation41_spill]] }
 0x129   :  { %v559_v26 = vld [vmem:[%s2403_s21 + $0x8] sm:$0xff]  ;;  %v558_v31 = vld [vmem:[%s2403_s21] sm:$0xff]  ;;  %s2409_s29 = sld [smem:[#allocation48_spill]] }
 0x12a   :  { %v557_v27 = vld [vmem:[%s2404_s15 + $0x8] sm:$0xff]  ;;  %581 = vmatpush.msrb.mxu0 %v559_v26  ;;  %v556_v32 = vld [vmem:[%s2404_s15] sm:$0xff]  ;;  %v668_v59 = vsub.f32 1.0, %v667_v58  ;;  %s2410_s22 = sld [smem:[#allocation50_spill]] }
 0x12b   :  { %610 = vmatpush.msrb.mxu1 %v557_v27  ;;  %v1438_v28 = vld [vmem:[%s2405_s16] ss:$0 sm:$0xff]  ;;  %s2411_s24 = sld [smem:[#allocation51_spill]] }
 0x12c   :  { %582 = vmatpush.msrb.mxu0 %v558_v31  ;;  %v749_v35 = vld [vmem:[%s2406_s25 + $0x8] sm:$0xff]  ;;  %v748_v36 = vld [vmem:[%s2406_s25] sm:$0xff]  ;;  %v669_v60 = vmul.f32 %v1456_v57, %v668_v59  ;;  %s2412_s23 = sld [smem:[#allocation52_spill]] }
 0x12d   :  { %480 = vperm.xlu0 %1435, %v477_v5   ;;  %483 = vperm.xlu1 %1436, %v478_v6   ;;  %v1439_v50 = vld [vmem:[%s2407_s4] ss:$0 sm:$0xff]  ;;  %s2413_s26 = sld [smem:[#allocation53_spill]] }
 0x12e   :  { %611 = vmatpush.msrb.mxu1 %v556_v32  ;;  %767 = vmatpush.msra.mxu0 %v749_v35  ;;  %v670_v61 = vadd.f32 %v1456_v57, %v669_v60  ;;  %v1441_v35 = vld [vmem:[#allocation9] ss:$0 sm:$0xff]  ;;  %s2414_s28 = sld [smem:[#allocation54_spill]] }
 0x12f   :  { %s2415_s19 = sld [smem:[#allocation42_spill]] }
 0x130   :  { %1340 = vmatmul.msk.f32.gmra.mxu1 %vm427_vm2, %v421_v9  ;;  %768 = vmatpush.msra.mxu0 %v748_v36  ;;  %v2293_v62 = vsel %vm671_vm8, %v1456_v57, %v670_v61 }
 0x197   :  { %v467_v10 = vpop.permute.xlu0 %466  ;;  %v470_v12 = vpop.permute.xlu1 %469 }
 0x198   :  { %vm471_vm3 = vcmp.eq.s32.totalorder %v462_v13, %v467_v10  ;;  %vm472_vm5 = vcmp.eq.s32.totalorder %v462_v13, %v470_v12 }
 0x199   :  { %v2249_v19 = vsel %vm471_vm3, 1.0, %v1965_v18  ;;  %v2259_v22 = vsel %vm472_vm5, 1.0, %v1965_v18 }
 0x19f   :  { %v481_v14 = vpop.permute.xlu0 %480  ;;  %v484_v21 = vpop.permute.xlu1 %483 }
 0x1a0   :  { %vm485_vm4 = vcmp.eq.s32.totalorder %v462_v13, %v481_v14  ;;  %vm486_vm6 = vcmp.eq.s32.totalorder %v462_v13, %v484_v21 }
 0x1a1   :  { %v2252_v20 = vsel %vm485_vm4, 1.0, %v1965_v18  ;;  %v2262_v23 = vsel %vm486_vm6, 1.0, %v1965_v18 }
 0x1a3   :  { %v417_v16 = vpop.f32.mrf.mxu0 }
 0x1a4   :  { %v418_v17 = vadd.f32 %v1437_v15, %v417_v16 }
 0x1a5   :  { %v455_v29 = vpop.f32.mrf.mxu1 }
 0x1a6   :  { %519 = vmatpush.msra.mxu2 %v418_v17  ;;  %548 = vmatpush.msra.mxu3 %v418_v17  ;;  %v2273_v30 = vadd.f32 %v1438_v28, %v455_v29  ;;  %v1440_v29 = vld [vmem:[#allocation7] ss:$0 sm:$0xff] }
 0x1a7   :  { %1346 = vmatmul.msk.f32.vlgmr.msra.gmra.mxu2 %vm396_vm0, %v2249_v19  ;;  %1348 = vmatmul.msk.f32.vlgmr.msra.gmra.mxu3 %vm396_vm0, %v2252_v20 }
 0x1a8   :  { %641 = vmatpush.msrb.mxu2 %v620_v24 }
 0x1aa   :  { %642 = vmatpush.msrb.mxu2 %v619_v25 }
 0x1ad   :  { %v458_v33 = vpop.f32.mrf.mxu1 }
 0x1ae   :  { %v2279_v34 = vadd.f32 %v1438_v28, %v458_v33 }
 0x1af   :  { %1347 = vmatmul.msk.f32.gmra.mxu2 %vm396_vm0, %v2259_v22  ;;  %1349 = vmatmul.msk.f32.gmra.mxu3 %vm396_vm0, %v2262_v23 }
 0x1b7   :  { %1354 = vmatmul.msk.f32.vlgmr.msrb.gmra.mxu2 %vm560_vm7, %v2273_v30 }
 0x1bf   :  { %1355 = vmatmul.msk.f32.gmra.mxu2 %vm560_vm7, %v2279_v34 }
 0x22a   :  { %v521_v37 = vpop.f32.mrf.mxu2  ;;  %v550_v38 = vpop.f32.mrf.mxu3 }
 0x22b   :  { %1350 = vmatmul.msk.f32.vlgmr.msrb.gmra.mxu0 %vm560_vm7, %v550_v38  ;;  %1352 = vmatmul.msk.f32.vlgmr.msrb.gmra.mxu1 %vm560_vm7, %v521_v37 }
 0x232   :  { %v524_v39 = vpop.f32.mrf.mxu2  ;;  %v553_v40 = vpop.f32.mrf.mxu3 }
 0x233   :  { %1351 = vmatmul.msk.f32.gmra.mxu0 %vm560_vm7, %v553_v40  ;;  %1353 = vmatmul.msk.f32.gmra.mxu1 %vm560_vm7, %v524_v39 }
 0x23a   :  { %v644_v41 = vpop.f32.mrf.mxu2 }
 0x23b   :  { %1357 = vmatmul.msk.f32.vlgmr.msra.gmra.mxu0 %vm560_vm7, %v418_v17 }
 0x242   :  { %v647_v44 = vpop.f32.mrf.mxu2 }
 0x2a8   :  { %v584_v42 = vpop.f32.mrf.mxu0  ;;  %v613_v43 = vpop.f32.mrf.mxu1 }
 0x2a9   :  { %v614_v48 = vadd.f32 %v613_v43, %v584_v42 }
 0x2ab   :  { %v650_v52 = vadd.f32 %v644_v41, %v614_v48 }
 0x2ad   :  { %v656_v54 = vadd.f32 %v1439_v50, %v650_v52 }
 0x2af   :  { %v660_v55 = vsel %vm560_vm7, %v656_v54, 0.0 }
 0x2b0   :  { %v587_v45 = vpop.f32.mrf.mxu0  ;;  %v616_v46 = vpop.f32.mrf.mxu1 }
 0x2b1   :  { %v617_v47 = vadd.f32 %v616_v46, %v587_v45  ;;  %v2302_v46 = vshrl.u32 %v461_v11, 7  ;;  %v1443_v11 = vld [vmem:[#allocation10] ss:$0 sm:$0xff] }
 0x2b3   :  { %v651_v49 = vadd.f32 %v647_v44, %v617_v47  ;;  %v1442_v47 = vld [vmem:[%s2408_s18] ss:$0 sm:$0xff] }
 0x2b4   :  { %vm495_vm15 = vcmp.eq.s32.totalorder %v2302_v46, %v1442_v47 }
 0x2b5   :  { %v657_v51 = vadd.f32 %v1439_v50, %v651_v49  ;;  %v2307_v48 = vsel %vm495_vm15, 1.0, %v1965_v18  ;;  %v747_v50 = vld [vmem:[%s2409_s29 + $0x8] sm:$0xff]  ;;  %vm1208_vm15 = vcmask 58368  }
 0x2b7   :  { %v663_v53 = vsel %vm560_vm7, %v657_v51, 0.0 }
 0x2b8   :  { %664 = vadd.xlane.f32.xlu2 %v663_v53  ;;  %v770_v53 = vpop.f32.mrf.mxu0 }
 0x2c0   :  { %661 = vadd.xlane.f32.xlu2 %v660_v55 }
 0x32b   :  { %v665_v63 = vpop.xlane.xlu2 %664 }
 0x32c   :  { %v674_v0 = vmul.f32 %v2293_v62, %v665_v63 }
 0x32e   :  { %v676_v1 = vsub.f32 %v657_v51, %v674_v0  ;;  %v746_v51 = vld [vmem:[%s2409_s29] sm:$0xff] }
 0x330   :  { %v678_v2 = vmul.f32 %v676_v1, %v676_v1 }
 0x332   :  { %v682_v3 = vsel %vm560_vm7, %v678_v2, 0.0 }
 0x333   :  { %683 = vadd.xlane.f32.xlu0 %v682_v3  ;;  %v662_v4 = vpop.xlane.xlu2 %661 }
 0x334   :  { %v673_v5 = vmul.f32 %v2293_v62, %v662_v4 }
 0x336   :  { %v675_v6 = vsub.f32 %v656_v54, %v673_v5 }
 0x338   :  { %v677_v7 = vmul.f32 %v675_v6, %v675_v6 }
 0x33a   :  { %v679_v8 = vsel %vm560_vm7, %v677_v7, 0.0 }
 0x33b   :  { %680 = vadd.xlane.f32.xlu1 %v679_v8 }
 0x3a6   :  { %v684_v9 = vpop.xlane.xlu0 %683 }
 0x3a7   :  { %v686_v10 = vmul.f32 %v684_v9, %v2293_v62  ;;  %v1444_v9 = vld [vmem:[#allocation12] ss:$0 sm:$0xff] }
 0x3a9   :  { %v688_v12 = vadd.f32 1e-05, %v686_v10 }
 0x3ab   :  { %1457 = vrsqrt.f32 %v688_v12  ;;  %vm705_vm10 = vweird.f32 %v688_v12 }
 0x3ae   :  { %v681_v13 = vpop.xlane.xlu1 %680 }
 0x3af   :  { %v685_v14 = vmul.f32 %v681_v13, %v2293_v62 }
 0x3b1   :  { %v1458_v15 = vpop.eup %1457  ;;  %v687_v16 = vadd.f32 1e-05, %v685_v14 }
 0x3b2   :  { %v700_v17 = vmul.f32 %v1458_v15, %v688_v12  ;;  %vm706_vm9 = vweird.f32 %v1458_v15  ;;  %v1445_v12 = vld [vmem:[#allocation13] ss:$0 sm:$0xff] }
 0x3b3   :  { %1459 = vrsqrt.f32 %v687_v16  ;;  %vm707_vm11 = vmor %vm705_vm10, %vm706_vm9  ;;  %vm695_vm13 = vweird.f32 %v687_v16 }
 0x3b4   :  { %v701_v21 = vmul.f32 %v1458_v15, %v700_v17  ;;  %v881_v17 = vld [vmem:[%s2410_s22 + $0x8] sm:$0xff] }
 0x3b6   :  { %v702_v24 = vmul.f32 0.5, %v701_v21 }
 0x3b8   :  { %v703_v25 = vsub.f32 1.5, %v702_v24  ;;  %v943_v24 = vld [vmem:[#allocation16 + $0x8] sm:$0xff] }
 0x3b9   :  { %v1460_v26 = vpop.eup %1459 }
 0x3ba   :  { %v704_v27 = vmul.f32 %v1458_v15, %v703_v25  ;;  %v690_v28 = vmul.f32 %v1460_v26, %v687_v16  ;;  %vm696_vm12 = vweird.f32 %v1460_v26  ;;  %v883_v16 = vld [vmem:[#allocation15 + $0x8] sm:$0xff]  ;;  %v942_v25 = vld [vmem:[#allocation16] sm:$0xff] }
 0x3bb   :  { %vm697_vm14 = vmor %vm695_vm13, %vm696_vm12  ;;  %904 = vmatpush.msra.mxu2 %v883_v16 }
 0x3bc   :  { %v708_v31 = vsel %vm707_vm11, %v1458_v15, %v704_v27  ;;  %v691_v32 = vmul.f32 %v1460_v26, %v690_v28  ;;  %v1055_v27 = vld [vmem:[#allocation22] sm:$0xff] }
 0x3bd   :  { %v710_v33 = vmul.f32 %v708_v31, %v676_v1 }
 0x3be   :  { %v692_v36 = vmul.f32 0.5, %v691_v32 }
 0x3bf   :  { %v715_v37 = vmul.f32 %v1440_v29, %v710_v33 }
 0x3c0   :  { %v693_v38 = vsub.f32 1.5, %v692_v36 }
 0x3c1   :  { %v720_v39 = vadd.f32 %v1441_v35, %v715_v37 }
 0x3c2   :  { %v694_v40 = vmul.f32 %v1460_v26, %v693_v38 }
 0x3c3   :  { %1461 = vtanh.f32 %v720_v39  ;;  %v1446_v39 = vld [vmem:[#allocation18] ss:$0 sm:$0xff] }
 0x3c4   :  { %v698_v41 = vsel %vm697_vm14, %v1460_v26, %v694_v40  ;;  %v882_v26 = vld [vmem:[#allocation15] sm:$0xff]  ;;  %vm1179_vm14 = vcmask 261120  }
 0x3c5   :  { %v709_v42 = vmul.f32 %v698_v41, %v675_v6  ;;  %905 = vmatpush.msra.mxu2 %v882_v26 }
 0x3c7   :  { %v714_v43 = vmul.f32 %v1440_v29, %v709_v42 }
 0x3c9   :  { %v1462_v44 = vpop.eup %1461  ;;  %v719_v45 = vadd.f32 %v1441_v35, %v714_v43 }
 0x3ca   :  { %740 = vmatpush.msrb.mxu3 %v1462_v44 }
 0x3cb   :  { %1463 = vtanh.f32 %v719_v45 }
 0x3d1   :  { %v1464_v49 = vpop.eup %1463 }
 0x3d2   :  { %741 = vmatpush.msrb.mxu3 %v1464_v49 }
 0x3d3   :  { %1356 = vmatmul.msk.f32.vlgmr.msrb.gmra.mxu3 %vm560_vm7, %v2307_v48 }
 0x3d4   :  { %790 = vmatpush.msra.mxu3 %v747_v50 }
 0x3d6   :  { %791 = vmatpush.msra.mxu3 %v746_v51 }
 0x3d8   :  { %933 = vmatpush.msrb.mxu3 %v881_v17 }
 0x456   :  { %v743_v52 = vpop.f32.mrf.mxu3 }
 0x457   :  { %1358 = vmatmul.msk.f32.vlgmr.msra.gmra.mxu3 %vm560_vm7, %v743_v52 }
 0x4da   :  { %v793_v54 = vpop.f32.mrf.mxu3 }
 0x4db   :  { %v794_v55 = vadd.f32 %v793_v54, %v770_v53 }
 0x4dd   :  { %v800_v56 = vadd.f32 %v1443_v11, %v794_v55 }
 0x4df   :  { %v803_v57 = vsel %vm560_vm7, %v800_v56, 0.0 }
 0x4e0   :  { %804 = vadd.xlane.f32.xlu2 %v803_v57 }
 0x553   :  { %v805_v58 = vpop.xlane.xlu2 %804 }
 0x554   :  { %v806_v59 = vmul.f32 %v805_v58, %v2293_v62 }
 0x556   :  { %v807_v60 = vsub.f32 %v800_v56, %v806_v59 }
 0x558   :  { %v808_v61 = vmul.f32 %v807_v60, %v807_v60 }
 0x55a   :  { %v809_v63 = vsel %vm560_vm7, %v808_v61, 0.0 }
 0x55b   :  { %810 = vadd.xlane.f32.xlu2 %v809_v63 }
 0x5ce   :  { %v811_v0 = vpop.xlane.xlu2 %810 }
 0x5cf   :  { %v812_v1 = vmul.f32 %v811_v0, %v2293_v62 }
 0x5d1   :  { %v813_v2 = vadd.f32 1e-05, %v812_v1  ;;  %v1054_v1 = vld [vmem:[#allocation21 + $0x8] sm:$0xff] }
 0x5d3   :  { %1465 = vrsqrt.f32 %v813_v2  ;;  %vm820_vm2 = vweird.f32 %v813_v2 }
 0x5d9   :  { %v1466_v3 = vpop.eup %1465 }
 0x5da   :  { %v815_v4 = vmul.f32 %v1466_v3, %v813_v2  ;;  %vm821_vm1 = vweird.f32 %v1466_v3 }
 0x5db   :  { %vm822_vm3 = vmor %vm820_vm2, %vm821_vm1 }
 0x5dc   :  { %v816_v5 = vmul.f32 %v1466_v3, %v815_v4 }
 0x5de   :  { %v817_v6 = vmul.f32 0.5, %v816_v5 }
 0x5e0   :  { %v818_v7 = vsub.f32 1.5, %v817_v6 }
 0x5e2   :  { %v819_v8 = vmul.f32 %v1466_v3, %v818_v7 }
 0x5e4   :  { %v823_v10 = vsel %vm822_vm3, %v1466_v3, %v819_v8  ;;  %v1447_v8 = vld [vmem:[%s2411_s24] ss:$0 sm:$0xff] }
 0x5e5   :  { %v824_v13 = vmul.f32 %v823_v10, %v807_v60 }
 0x5e7   :  { %v828_v14 = vmul.f32 %v1444_v9, %v824_v13 }
 0x5e9   :  { %v832_v15 = vadd.f32 %v1445_v12, %v828_v14  ;;  %v1448_v12 = vld [vmem:[#allocation19] ss:$0 sm:$0xff] }
 0x5eb   :  { %1467 = vtanh.f32 %v832_v15 }
 0x5f1   :  { %v1468_v21 = vpop.eup %1467 }
 0x5f2   :  { %849 = vmatpush.msrb.mxu0 %v1468_v21  ;;  %872 = vmatpush.msra.mxu1 %v1468_v21 }
 0x5f3   :  { %1359 = vmatmul.msk.f32.vlgmr.msrb.gmra.mxu0 %vm396_vm0, %v2249_v19  ;;  %1361 = vmatmul.msk.f32.vlgmr.msra.gmra.mxu1 %vm396_vm0, %v2252_v20  ;;  %v880_v19 = vld [vmem:[%s2410_s22] sm:$0xff]  ;;  %v1056_v20 = vld [vmem:[#allocation22 + $0x8] sm:$0xff] }
 0x5f4   :  { %958 = vmatpush.msra.mxu0 %v943_v24  ;;  %934 = vmatpush.msrb.mxu3 %v880_v19 }
 0x5f5   :  { %1074 = vmatpush.msrb.mxu2 %v1056_v20 }
 0x5f6   :  { %959 = vmatpush.msra.mxu0 %v942_v25  ;;  %1097 = vmatpush.msra.mxu3 %v1054_v1  ;;  %v1454_v1 = vld [vmem:[%s2415_s19] ss:$0 sm:$0xff] }
 0x5f7   :  { %1075 = vmatpush.msrb.mxu2 %v1055_v27  ;;  %vm1205_vm1 = vcmp.eq.s32.totalorder %v2302_v46, %v1454_v1 }
 0x5fb   :  { %1360 = vmatmul.msk.f32.gmra.mxu0 %vm396_vm0, %v2259_v22  ;;  %1362 = vmatmul.msk.f32.gmra.mxu1 %vm396_vm0, %v2262_v23 }
 0x603   :  { %1367 = vmatmul.msk.f32.vlgmr.msra.gmra.mxu0 %vm560_vm7, %v2273_v30 }
 0x60b   :  { %1368 = vmatmul.msk.f32.gmra.mxu0 %vm560_vm7, %v2279_v34 }
 0x670   :  { %v851_v28 = vpop.f32.mrf.mxu0  ;;  %v874_v29 = vpop.f32.mrf.mxu1 }
 0x671   :  { %1363 = vmatmul.msk.f32.vlgmr.msra.gmra.mxu2 %vm560_vm7, %v874_v29  ;;  %1365 = vmatmul.msk.f32.vlgmr.msrb.gmra.mxu3 %vm560_vm7, %v851_v28  ;;  %v1053_v28 = vld [vmem:[#allocation21] sm:$0xff] }
 0x672   :  { %1098 = vmatpush.msra.mxu3 %v1053_v28 }
 0x678   :  { %v854_v22 = vpop.f32.mrf.mxu0  ;;  %v877_v23 = vpop.f32.mrf.mxu1 }
 0x679   :  { %1364 = vmatmul.msk.f32.gmra.mxu2 %vm560_vm7, %v877_v23  ;;  %1366 = vmatmul.msk.f32.gmra.mxu3 %vm560_vm7, %v854_v22  ;;  %v1449_v22 = vld [vmem:[%s2412_s23] ss:$0 sm:$0xff] }
 0x680   :  { %v961_v30 = vpop.f32.mrf.mxu0 }
 0x681   :  { %1370 = vmatmul.msk.f32.vlgmr.msrb.gmra.mxu2 %vm560_vm7, %v1468_v21 }
 0x688   :  { %v964_v36 = vpop.f32.mrf.mxu0 }
 0x6f4   :  { %v907_v34 = vpop.f32.mrf.mxu2  ;;  %v936_v31 = vpop.f32.mrf.mxu3 }
 0x6f5   :  { %v937_v37 = vadd.f32 %v936_v31, %v907_v34 }
 0x6f7   :  { %v967_v41 = vadd.f32 %v961_v30, %v937_v37 }
 0x6f9   :  { %v973_v43 = vadd.f32 %v1446_v39, %v967_v41 }
 0x6fb   :  { %v977_v44 = vsel %vm560_vm7, %v973_v43, 0.0 }
 0x6fc   :  { %v910_v32 = vpop.f32.mrf.mxu2  ;;  %v939_v33 = vpop.f32.mrf.mxu3 }
 0x6fd   :  { %v940_v35 = vadd.f32 %v939_v33, %v910_v32 }
 0x6ff   :  { %v968_v38 = vadd.f32 %v964_v36, %v940_v35 }
 0x701   :  { %v974_v40 = vadd.f32 %v1446_v39, %v968_v38  ;;  %v1142_v38 = vld [vmem:[#allocation24 + $0x8] sm:$0xff]  ;;  %v1141_v39 = vld [vmem:[#allocation24] sm:$0xff] }
 0x703   :  { %v980_v42 = vsel %vm560_vm7, %v974_v40, 0.0 }
 0x704   :  { %981 = vadd.xlane.f32.xlu2 %v980_v42  ;;  %v1077_v23 = vpop.f32.mrf.mxu2 }
 0x70c   :  { %978 = vadd.xlane.f32.xlu2 %v977_v44 }
 0x777   :  { %v982_v45 = vpop.xlane.xlu2 %981 }
 0x778   :  { %v984_v47 = vmul.f32 %v982_v45, %v2293_v62 }
 0x77a   :  { %v986_v49 = vsub.f32 %v974_v40, %v984_v47 }
 0x77c   :  { %v988_v50 = vmul.f32 %v986_v49, %v986_v49 }
 0x77e   :  { %v992_v51 = vsel %vm560_vm7, %v988_v50, 0.0 }
 0x77f   :  { %993 = vadd.xlane.f32.xlu2 %v992_v51  ;;  %v979_v52 = vpop.xlane.xlu2 %978 }
 0x780   :  { %v983_v11 = vmul.f32 %v979_v52, %v2293_v62  ;;  %v1450_v52 = vld [vmem:[%s2413_s26] ss:$0 sm:$0xff] }
 0x782   :  { %v985_v53 = vsub.f32 %v973_v43, %v983_v11  ;;  %v1174_v43 = vld [vmem:[%s2145_s17 + $0x18] sm:$0xff] }
 0x783   :  { %1195 = vmatpush.msra.mxu2 %v1174_v43 }
 0x784   :  { %v987_v54 = vmul.f32 %v985_v53, %v985_v53 }
 0x786   :  { %v989_v55 = vsel %vm560_vm7, %v987_v54, 0.0 }
 0x787   :  { %990 = vadd.xlane.f32.xlu2 %v989_v55 }
 0x7f2   :  { %v994_v56 = vpop.xlane.xlu2 %993 }
 0x7f3   :  { %v996_v57 = vmul.f32 %v994_v56, %v2293_v62 }
 0x7f5   :  { %v998_v58 = vadd.f32 1e-05, %v996_v57  ;;  %v1173_v57 = vld [vmem:[%s2145_s17 + $0x10] sm:$0xff] }
 0x7f6   :  { %1196 = vmatpush.msra.mxu2 %v1173_v57 }
 0x7f7   :  { %1469 = vrsqrt.f32 %v998_v58  ;;  %vm1015_vm5 = vweird.f32 %v998_v58 }
 0x7fa   :  { %v991_v59 = vpop.xlane.xlu2 %990 }
 0x7fb   :  { %v995_v60 = vmul.f32 %v991_v59, %v2293_v62  ;;  %v1171_v59 = vld [vmem:[%s2145_s17] sm:$0xff] }
 0x7fd   :  { %v1470_v61 = vpop.eup %1469  ;;  %v997_v63 = vadd.f32 1e-05, %v995_v60  ;;  %v1452_v60 = vld [vmem:[#allocation25] ss:$0 sm:$0xff] }
 0x7fe   :  { %v1010_v0 = vmul.f32 %v1470_v61, %v998_v58  ;;  %vm1016_vm4 = vweird.f32 %v1470_v61  ;;  %v1172_v58 = vld [vmem:[%s2145_s17 + $0x8] sm:$0xff] }
 0x7ff   :  { %1471 = vrsqrt.f32 %v997_v63  ;;  %vm1017_vm6 = vmor %vm1015_vm5, %vm1016_vm4  ;;  %vm1005_vm9 = vweird.f32 %v997_v63  ;;  %1197 = vmatpush.msra.mxu2 %v1172_v58  ;;  %vm1286_vm5 = vcmask 11264  }
 0x800   :  { %v1011_v2 = vmul.f32 %v1470_v61, %v1010_v0 }
 0x801   :  { %1198 = vmatpush.msra.mxu2 %v1171_v59 }
 0x802   :  { %v1012_v3 = vmul.f32 0.5, %v1011_v2  ;;  %v1374_v2 = vsel %vm1205_vm1, 1.0, %v1965_v18 }
 0x804   :  { %v1013_v4 = vsub.f32 1.5, %v1012_v3  ;;  %v1209_v3 = vsel %vm1208_vm15, %v1374_v2, 0.0 }
 0x805   :  { %v1472_v5 = vpop.eup %1471  ;;  %1210 = vadd.xlane.f32.xlu2 %v1209_v3 }
 0x806   :  { %v1014_v6 = vmul.f32 %v1470_v61, %v1013_v4  ;;  %v1000_v7 = vmul.f32 %v1472_v5, %v997_v63  ;;  %vm1006_vm8 = vweird.f32 %v1472_v5  ;;  %v1453_v4 = vld [vmem:[#allocation27] ss:$0 sm:$0xff] }
 0x807   :  { %vm1007_vm10 = vmor %vm1005_vm9, %vm1006_vm8 }
 0x808   :  { %v1018_v9 = vsel %vm1017_vm6, %v1470_v61, %v1014_v6  ;;  %v1001_v10 = vmul.f32 %v1472_v5, %v1000_v7 }
 0x809   :  { %v1020_v13 = vmul.f32 %v1018_v9, %v986_v49 }
 0x80a   :  { %v1002_v14 = vmul.f32 0.5, %v1001_v10 }
 0x80b   :  { %v1025_v15 = vmul.f32 %v1447_v8, %v1020_v13 }
 0x80c   :  { %v1003_v16 = vsub.f32 1.5, %v1002_v14 }
 0x80d   :  { %v1030_v17 = vadd.f32 %v1448_v12, %v1025_v15 }
 0x80e   :  { %v1004_v21 = vmul.f32 %v1472_v5, %v1003_v16 }
 0x80f   :  { %1473 = vtanh.f32 %v1030_v17 }
 0x810   :  { %v1008_v24 = vsel %vm1007_vm10, %v1472_v5, %v1004_v21 }
 0x811   :  { %v1019_v25 = vmul.f32 %v1008_v24, %v985_v53 }
 0x813   :  { %v1024_v26 = vmul.f32 %v1447_v8, %v1019_v25 }
 0x815   :  { %v1474_v19 = vpop.eup %1473  ;;  %v1029_v20 = vadd.f32 %v1448_v12, %v1024_v26 }
 0x816   :  { %1047 = vmatpush.msrb.mxu1 %v1474_v19 }
 0x817   :  { %1475 = vtanh.f32 %v1029_v20 }
 0x81d   :  { %v1476_v27 = vpop.eup %1475 }
 0x81e   :  { %1048 = vmatpush.msrb.mxu1 %v1476_v27 }
 0x81f   :  { %1369 = vmatmul.msk.f32.vlgmr.msrb.gmra.mxu1 %vm560_vm7, %v2307_v48 }
 0x820   :  { %1164 = vmatpush.msra.mxu1 %v1142_v38 }
 0x822   :  { %1165 = vmatpush.msra.mxu1 %v1141_v39 }
 0x878   :  { %v1211_v7 = vpop.xlane.xlu2 %1210 }
 0x879   :  { %v1212_v8 = vmax.f32 %v1211_v7, 1.0 }
 0x87b   :  { %v1224_v12 = vand.u32 2147483648, %v1212_v8  ;;  %v1222_v14 = vand.u32 2147483647, %v1212_v8 }
 0x87d   :  { %v1225_v18 = vor.u32 1.1754944e-38, %v1224_v12  ;;  %vm1223_vm4 = vcmp.eq.f32.partialorder %v1222_v14, 8.507059e+37 }
 0x89c   :  { %v1050_v29 = vpop.f32.mrf.mxu1 }
 0x89d   :  { %1371 = vmatmul.msk.f32.vlgmr.msra.gmra.mxu3 %vm560_vm7, %v1050_v29 }
 0x920   :  { %v1100_v30 = vpop.f32.mrf.mxu3 }
 0x921   :  { %v1101_v34 = vadd.f32 %v1100_v30, %v1077_v23 }
 0x923   :  { %v1107_v31 = vadd.f32 %v1449_v22, %v1101_v34 }
 0x925   :  { %v1110_v32 = vsel %vm560_vm7, %v1107_v31, 0.0 }
 0x926   :  { %1111 = vadd.xlane.f32.xlu0 %v1110_v32 }
 0x999   :  { %v1112_v33 = vpop.xlane.xlu0 %1111 }
 0x99a   :  { %v1113_v35 = vmul.f32 %v1112_v33, %v2293_v62 }
 0x99c   :  { %v1114_v36 = vsub.f32 %v1107_v31, %v1113_v35 }
 0x99e   :  { %v1115_v37 = vmul.f32 %v1114_v36, %v1114_v36 }
 0x9a0   :  { %v1116_v48 = vsel %vm560_vm7, %v1115_v37, 0.0 }
 0x9a1   :  { %1117 = vadd.xlane.f32.xlu1 %v1116_v48 }
 0xa14   :  { %v1118_v40 = vpop.xlane.xlu1 %1117 }
 0xa15   :  { %v1119_v41 = vmul.f32 %v1118_v40, %v2293_v62  ;;  %v1451_v62 = vld [vmem:[%s2414_s28] ss:$0 sm:$0xff] }
 0xa17   :  { %v1120_v42 = vadd.f32 1e-05, %v1119_v41 }
 0xa19   :  { %1477 = vrsqrt.f32 %v1120_v42  ;;  %vm1127_vm12 = vweird.f32 %v1120_v42 }
 0xa1f   :  { %v1478_v44 = vpop.eup %1477 }
 0xa20   :  { %v1122_v45 = vmul.f32 %v1478_v44, %v1120_v42  ;;  %vm1128_vm11 = vweird.f32 %v1478_v44 }
 0xa21   :  { %vm1129_vm13 = vmor %vm1127_vm12, %vm1128_vm11 }
 0xa22   :  { %v1123_v47 = vmul.f32 %v1478_v44, %v1122_v45 }
 0xa24   :  { %v1124_v49 = vmul.f32 0.5, %v1123_v47 }
 0xa26   :  { %v1125_v50 = vsub.f32 1.5, %v1124_v49 }
 0xa28   :  { %v1126_v51 = vmul.f32 %v1478_v44, %v1125_v50 }
 0xa2a   :  { %v1130_v11 = vsel %vm1129_vm13, %v1478_v44, %v1126_v51 }
 0xa2b   :  { %v1131_v53 = vmul.f32 %v1130_v11, %v1114_v36 }
 0xa2d   :  { %v1135_v54 = vmul.f32 %v1450_v52, %v1131_v53 }
 0xa2f   :  { %v1139_v55 = vadd.f32 %v1451_v62, %v1135_v54 }
 0xa31   :  { %1479 = vtanh.f32 %v1139_v55 }
 0xa32   :  { %1481 = vrcp.f32 %v1212_v8 }
 0xa37   :  { %v1480_v56 = vpop.eup %1479 }
 0xa38   :  { %1372 = vmatmul.msk.f32.vlgmr.msra.gmra.mxu1 %vm560_vm7, %v1480_v56  ;;  %v1482_v9 = vpop.eup %1481  ;;  %vm1218_vm7 = vweird.f32 %v1212_v8 }
 0xa39   :  { %v1214_v10 = vmul.f32 %v1482_v9, %v1212_v8  ;;  %vm1219_vm2 = vweird.f32 %v1482_v9 }
 0xa3a   :  { %vm1220_vm3 = vmor %vm1218_vm7, %vm1219_vm2 }
 0xa3b   :  { %v1215_v13 = vsub.f32 1.0, %v1214_v10 }
 0xa3d   :  { %v1216_v46 = vmul.f32 %v1482_v9, %v1215_v13 }
 0xa3f   :  { %v1217_v15 = vadd.f32 %v1482_v9, %v1216_v46 }
 0xa41   :  { %v1221_v16 = vsel %vm1220_vm3, %v1482_v9, %v1217_v15 }
 0xa42   :  { %v1226_v17 = vsel %vm1223_vm4, %v1225_v18, %v1221_v16 }
 0xa43   :  { %v1227_v21 = vmul.f32 %v1374_v2, %v1226_v17 }
 0xa45   :  { %1375 = vmatpush.xpose.msk.msrb.mxu3 %vm396_vm0, %v1227_v21 }
 0xab5   :  { %v1167_v61 = vpop.f32.mrf.mxu1 }
 0xab6   :  { %v1168_v63 = vadd.f32 %v1452_v60, %v1167_v61 }
 0xab8   :  { %v1170_v0 = vmax.f32 %v1168_v63, 0.0 }
 0xaba   :  { %1373 = vmatmul.msk.f32.vlgmr.msra.gmra.mxu2 %vm1179_vm14, %v1170_v0 }
 0xb3d   :  { %v1200_v5 = vpop.f32.mrf.mxu2 }
 0xb3e   :  { %v1201_v6 = vadd.f32 %v1453_v4, %v1200_v5 }
 0xb40   :  { %1228 = vxpose.xlu0.b32.start.end [1/1] (short) (narrow) %v1201_v6, 8 }
 0xbe4   :  { %v1244_v24 = vpop.trf.xlu0 }
 0xbe5   :  { %1376 = vmatmul.msk.f32.vlgmr.msrb.gmra.mxu3 %vm396_vm0, %v1244_v24 }
 0xc68   :  { %v1283_v25 = vpop.f32.mrf.mxu3 }
 0xc69   :  { %1287 = vst.msk [vmem:[%s2155_s13] sm:$0xf] %vm1286_vm5, %v1283_v25 }
 0xc6a   :  { %1292 = vsyncpa [#allocation3], 1 }
 0xc6b   :  { %1293 = vsyncpa [#allocation5], 1 }
 0xc6c   :  { %1294 = vsyncpa [#allocation8], 1 }
 0xc6d   :  { %1295 = vsyncpa [#allocation11], 1 }
 0xc6e   :  { %1296 = vsyncpa [#allocation14], 1 }
 0xc6f   :  { %1297 = vsyncpa [#allocation17], 1 }
 0xc70   :  { %1298 = vsyncpa [#allocation20], 1 }
 0xc71   :  { %1299 = vsyncpa [#allocation23], 1 }
 0xc72   :  { %1300 = vsyncpa [#allocation26], 1 }

</bundles_post_ra>
